<compile_context>
chip_gen: v6e
topology: v6e:2x2x1
jax: 0.10.0
libtpu: 0.0.40
codegen_flags: <defaults>
</compile_context>

<pallas_src>
import functools
import math

import jax
import jax.numpy as jnp
from jax.experimental import pallas as pl
from jax.experimental.pallas import tpu as pltpu

BN_EPS = 1e-5
BN_SCALE = 1.0 / math.sqrt(1.0 + BN_EPS)   # eval-mode BatchNorm1d w/ default stats
LEAKY_SLOPE = 0.01                         # F.leaky_relu default negative slope
LANE = 128                                 # TPU vreg lane width


def _round_up(x, m):
    return ((x + m - 1) // m) * m


# ------------------------------ Pallas kernel -------------------------------

def _qtucker_fused_kernel(x0_ref, adj_ref, hams_ref, sel_e1_ref, sel_r_ref,
                          rep_ref, til_ref, wf_ref, o_ref, *, num_layers):
    """Entire QTuckER forward (eval mode) on VMEM-resident, 128-padded operands.

    Shapes (Np = padded #nodes, Dp = padded feature width, B = padded batch):
      x0:  (Np, Dp) bf16   adj: (Np, Np) bf16   hams: (L, Dp, Dp) bf16
      sel_e1 / sel_r: (B, Np) bf16 one-hot      rep / til: (Dp, H*H) bf16
      wf:  (H*H, Dp) bf16  (core tensor permuted: wf[i*H+k, j] = W[k, i, j])
      out: (B, Np) f32     (columns >= n_entities are discarded by the caller)
    """
    f32 = jnp.float32
    bf16 = jnp.bfloat16

    x = x0_ref[...]                                   # (Np, Dp) bf16
    adj = adj_ref[...]                                # (Np, Np) bf16

    # ---- QGNN layers: X <- tanh(BN(adj @ (X @ hamilton))) ------------------
    for layer in range(num_layers):
        ham = hams_ref[layer]                                          # (Dp, Dp)
        support = jnp.dot(x, ham, preferred_element_type=f32)          # MXU, f32 acc
        agg = jnp.dot(adj, support.astype(bf16), preferred_element_type=f32)
        x = jnp.tanh(agg * BN_SCALE).astype(bf16)     # BN (eval) + tanh, f32 epilogue

    # ---- row gathers as one-hot matmuls ------------------------------------
    e1 = jnp.dot(sel_e1_ref[...], x, preferred_element_type=f32)       # (B, Dp)
    r = jnp.dot(sel_r_ref[...], x, preferred_element_type=f32)         # (B, Dp)
    e1 = (e1 * BN_SCALE).astype(bf16)                 # bn0 (eval); input_dropout = id
    r = r.astype(bf16)

    # ---- TuckER bilinear form, built entirely in VMEM ----------------------
    # A[b, i*H+k] = e1[b, i] * r[b, k]  (rep/til are 0/1 expansion matrices)
    a_rep = jnp.dot(e1, rep_ref[...], preferred_element_type=f32)      # (B, H*H)
    a_til = jnp.dot(r, til_ref[...], preferred_element_type=f32)       # (B, H*H)
    a = (a_rep * a_til).astype(bf16)
    # h[b, j] = sum_{i,k} e1[b,i] * r[b,k] * W[k,i,j]
    h = jnp.dot(a, wf_ref[...], preferred_element_type=f32)            # (B, Dp)
    h = h * BN_SCALE                                  # bn1 (eval); hidden_dropout = id
    h = jnp.where(h > 0, h, LEAKY_SLOPE * h)          # leaky_relu in f32

    # ---- entity scores: sigmoid(h @ X^T), lane-dense (B, Np) output --------
    scores = jax.lax.dot_general(h.astype(bf16), x,
                                 (((1,), (1,)), ((), ())),
                                 preferred_element_type=f32)           # (B, Np)
    o_ref[...] = jax.nn.sigmoid(scores)


# ------------------------------- model glue ---------------------------------

def make_quaternion_mul(kernel):
    """kernel: (in_features//4, out_features) -> hamilton (in_features, out_features)."""
    r, i, j, k = jnp.split(kernel, 4, axis=1)
    r2 = jnp.concatenate([r, -i, -j, -k], axis=0)
    i2 = jnp.concatenate([i, r, -k, j], axis=0)
    j2 = jnp.concatenate([j, k, r, -i], axis=0)
    k2 = jnp.concatenate([k, -j, i, r], axis=0)
    return jnp.concatenate([r2, i2, j2, k2], axis=1)


def prepare_qtucker_operands(params, adj, n_entities):
    """One-time (per parameter set) layout work, hoisted out of the hot path:
    hamilton construction, TuckER-core permutation, outer-product expansion
    matrices, zero-padding to 128-lane-dense tiles and bf16 casting."""
    X0 = params["embeddings"]                     # (Nn, emb_dim) f32
    Nn, emb_dim = X0.shape
    H = params["W"].shape[0]                      # hid_dim
    Dp = _round_up(max(emb_dim, H), LANE)         # padded feature / lane width
    Np = _round_up(Nn, LANE)                      # padded node count

    def pad2(x, rows, cols):
        out = jnp.zeros((rows, cols), jnp.bfloat16)
        return out.at[:x.shape[0], :x.shape[1]].set(x.astype(jnp.bfloat16))

    x0p = pad2(X0, Np, Dp)
    adjp = pad2(adj, Np, Np)
    hams = jnp.stack([pad2(make_quaternion_mul(w), Dp, Dp)
                      for w in params["qgnn_weights"]])          # (L, Dp, Dp)

    # TuckER core permuted so that wf[i*H + k, j] == W[k, i, j].
    wf = jnp.transpose(params["W"], (1, 0, 2)).reshape(H * H, H)
    wfp = pad2(wf, H * H, Dp)

    # Expansion matrices that build the outer product inside the kernel:
    #   rep[i, i*H + t] = 1  =>  (e1 @ rep)[b, i*H + k] = e1[b, i]
    #   til[k, j*H + k] = 1  =>  (r  @ til)[b, i*H + k] = r[b, k]
    rep = jnp.kron(jnp.eye(H, dtype=jnp.float32), jnp.ones((1, H), jnp.float32))
    til = jnp.kron(jnp.ones((1, H), jnp.float32), jnp.eye(H, dtype=jnp.float32))
    repp = pad2(rep, Dp, H * H)
    tilp = pad2(til, Dp, H * H)

    return dict(x0p=x0p, adjp=adjp, hams=hams, wfp=wfp, repp=repp, tilp=tilp,
                n_entities=n_entities, n_padded_nodes=Np,
                num_layers=len(params["qgnn_weights"]))


def qtucker_forward(prep, e1_idx, r_idx):
    """Per-forward hot path: build one-hot selectors and run ONE fused kernel."""
    B = e1_idx.shape[0]
    Bp = _round_up(B, 8)                          # sublane-aligned batch
    Np = prep["n_padded_nodes"]

    sel_e1 = jnp.zeros((Bp, Np), jnp.bfloat16).at[:B].set(
        jax.nn.one_hot(e1_idx, Np, dtype=jnp.bfloat16))
    sel_r = jnp.zeros((Bp, Np), jnp.bfloat16).at[:B].set(
        jax.nn.one_hot(r_idx + prep["n_entities"], Np, dtype=jnp.bfloat16))

    kernel = functools.partial(_qtucker_fused_kernel,
                               num_layers=prep["num_layers"])
    vmem = pl.BlockSpec(memory_space=pltpu.MemorySpace.VMEM)
    out = pl.pallas_call(
        kernel,
        out_shape=jax.ShapeDtypeStruct((Bp, Np), jnp.float32),
        in_specs=[vmem] * 8,
        out_specs=vmem,
    )(prep["x0p"], prep["adjp"], prep["hams"], sel_e1, sel_r,
      prep["repp"], prep["tilp"], prep["wfp"])

    # Columns >= n_entities (relation rows / zero padding) were only computed
    # to keep the output lane-dense; drop them here.
    return out[:B, :prep["n_entities"]]


def qtucker_reference(params, e1_idx, r_idx, adj, n_entities):
    """Pure-JAX f32 transliteration of the PyTorch forward (eval mode)."""
    X = params["embeddings"]
    for w in params["qgnn_weights"]:
        X = jnp.tanh((adj @ (X @ make_quaternion_mul(w))) * BN_SCALE)
    H = X.shape[1]
    e1 = X[e1_idx]
    x = (e1 * BN_SCALE)[:, None, :]
    r = X[r_idx + n_entities]
    W_mat = (r @ params["W"].reshape(H, H * H)).reshape(-1, H, H)
    x = jnp.matmul(x, W_mat).reshape(-1, H)
    x = x * BN_SCALE
    x = jnp.where(x > 0, x, LEAKY_SLOPE * x)
    x = x @ X[:n_entities].T
    return jax.nn.sigmoid(x)


# ----------------------------------- main ------------------------------------

if __name__ == "__main__":
    emb_dim = 32
    hid_dim = 32
    n_entities = 32
    n_relations = 8
    num_layers = 2
    batch = 8
    n_nodes = n_entities + n_relations

    key = jax.random.PRNGKey(0)
    k_emb, k_W, k_adj, k_e1, k_r, *k_qg = jax.random.split(key, 5 + num_layers)

    # Embedding table (xavier_normal_-style init).
    std = math.sqrt(2.0 / (n_nodes + emb_dim))
    embeddings = jax.random.normal(k_emb, (n_nodes, emb_dim), dtype=jnp.float32) * std

    # TuckER core tensor W ~ U(-1, 1), shape (hid, hid, hid).
    W = jax.random.uniform(k_W, (hid_dim, hid_dim, hid_dim), dtype=jnp.float32,
                           minval=-1.0, maxval=1.0)

    # QGNN layer weights: (in_features // 4, out_features), U(-stdv, stdv).
    qgnn_weights = []
    for layer in range(num_layers):
        in_f = emb_dim if layer == 0 else hid_dim
        stdv = math.sqrt(6.0 / (in_f // 4 + hid_dim))
        qgnn_weights.append(jax.random.uniform(
            k_qg[layer], (in_f // 4, hid_dim), dtype=jnp.float32,
            minval=-stdv, maxval=stdv))

    # Dense, symmetric, self-looped, row-normalised adjacency (stand-in for the
    # sparse normalised adj passed to the torch module).
    a = jax.random.uniform(k_adj, (n_nodes, n_nodes), dtype=jnp.float32)
    a = (a > 0.7).astype(jnp.float32)
    a = a + a.T + jnp.eye(n_nodes, dtype=jnp.float32)
    adj = a / jnp.sum(a, axis=1, keepdims=True)

    e1_idx = jax.random.randint(k_e1, (batch,), 0, n_entities)
    r_idx = jax.random.randint(k_r, (batch,), 0, n_relations)

    params = {"embeddings": embeddings, "W": W, "qgnn_weights": qgnn_weights}

    # One-time layout/precompute step (hoisted out of the per-forward path).
    prep = prepare_qtucker_operands(params, adj, n_entities)

    pred = qtucker_forward(prep, e1_idx, r_idx)
    pred = jax.block_until_ready(pred)

    ref = qtucker_reference(params, e1_idx, r_idx, adj, n_entities)
    assert pred.shape == (batch, n_entities)
    max_err = float(jnp.max(jnp.abs(pred - ref)))
    # bf16 MXU operands (f32 accumulation) vs. the f32 reference: allow a
    # correspondingly looser, still-meaningful tolerance on the sigmoid output.
    assert bool(jnp.allclose(pred, ref, atol=1e-2, rtol=1e-2)), (
        "max abs err = %f" % max_err)

    print("KERNEL_OK")
</pallas_src>

<mosaic_0001>
module attributes {stable_mosaic.version = 11 : i64} {
  func.func @_qtucker_fused_kernel(%arg0: memref<128x128xbf16, #tpu.memory_space<vmem>>, %arg1: memref<128x128xbf16, #tpu.memory_space<vmem>>, %arg2: memref<2x128x128xbf16, #tpu.memory_space<vmem>>, %arg3: memref<8x128xbf16, #tpu.memory_space<vmem>>, %arg4: memref<8x128xbf16, #tpu.memory_space<vmem>>, %arg5: memref<128x1024xbf16, #tpu.memory_space<vmem>>, %arg6: memref<128x1024xbf16, #tpu.memory_space<vmem>>, %arg7: memref<1024x128xbf16, #tpu.memory_space<vmem>>, %arg8: memref<8x128xf32, #tpu.memory_space<vmem>>) attributes {dimension_semantics = [], scalar_prefetch = 0 : i64, scratch_operands = 0 : i64, tpu.core_type = #tpu.core_type<tc>} {
    %c0 = arith.constant 0 : index
    %c0_0 = arith.constant 0 : index
    %0 = vector.load %arg0[%c0, %c0_0] : memref<128x128xbf16, #tpu.memory_space<vmem>>, vector<128x128xbf16>
    %c0_1 = arith.constant 0 : index
    %c0_2 = arith.constant 0 : index
    %1 = vector.load %arg1[%c0_1, %c0_2] : memref<128x128xbf16, #tpu.memory_space<vmem>>, vector<128x128xbf16>
    %c0_3 = arith.constant 0 : index
    %c0_4 = arith.constant 0 : index
    %c0_5 = arith.constant 0 : index
    %2 = vector.load %arg2[%c0_3, %c0_4, %c0_5] : memref<2x128x128xbf16, #tpu.memory_space<vmem>>, vector<1x128x128xbf16>
    %3 = vector.shape_cast %2 : vector<1x128x128xbf16> to vector<128x128xbf16>
    %cst = arith.constant dense<0.000000e+00> : vector<128x128xf32>
    %4 = tpu.matmul %0, %3, %cst {dimension_numbers = #tpu.dot_dimension_numbers<[1], [0], [0], [1], [0, 0, 1, 1], [], []>} : vector<128x128xbf16>, vector<128x128xbf16>, vector<128x128xf32> -> vector<128x128xf32>
    %5 = arith.truncf %4 : vector<128x128xf32> to vector<128x128xbf16>
    %cst_6 = arith.constant dense<0.000000e+00> : vector<128x128xf32>
    %6 = tpu.matmul %1, %5, %cst_6 {dimension_numbers = #tpu.dot_dimension_numbers<[1], [0], [0], [1], [0, 0, 1, 1], [], []>} : vector<128x128xbf16>, vector<128x128xbf16>, vector<128x128xf32> -> vector<128x128xf32>
    %cst_7 = arith.constant 0.999994993 : f32
    %7 = vector.broadcast %cst_7 : f32 to vector<128x128xf32>
    %8 = arith.mulf %6, %7 : vector<128x128xf32>
    %9 = math.tanh %8 : vector<128x128xf32>
    %10 = arith.truncf %9 : vector<128x128xf32> to vector<128x128xbf16>
    %c1 = arith.constant 1 : index
    %c0_8 = arith.constant 0 : index
    %c0_9 = arith.constant 0 : index
    %11 = vector.load %arg2[%c1, %c0_8, %c0_9] : memref<2x128x128xbf16, #tpu.memory_space<vmem>>, vector<1x128x128xbf16>
    %12 = vector.shape_cast %11 : vector<1x128x128xbf16> to vector<128x128xbf16>
    %cst_10 = arith.constant dense<0.000000e+00> : vector<128x128xf32>
    %13 = tpu.matmul %10, %12, %cst_10 {dimension_numbers = #tpu.dot_dimension_numbers<[1], [0], [0], [1], [0, 0, 1, 1], [], []>} : vector<128x128xbf16>, vector<128x128xbf16>, vector<128x128xf32> -> vector<128x128xf32>
    %14 = arith.truncf %13 : vector<128x128xf32> to vector<128x128xbf16>
    %cst_11 = arith.constant dense<0.000000e+00> : vector<128x128xf32>
    %15 = tpu.matmul %1, %14, %cst_11 {dimension_numbers = #tpu.dot_dimension_numbers<[1], [0], [0], [1], [0, 0, 1, 1], [], []>} : vector<128x128xbf16>, vector<128x128xbf16>, vector<128x128xf32> -> vector<128x128xf32>
    %cst_12 = arith.constant 0.999994993 : f32
    %16 = vector.broadcast %cst_12 : f32 to vector<128x128xf32>
    %17 = arith.mulf %15, %16 : vector<128x128xf32>
    %18 = math.tanh %17 : vector<128x128xf32>
    %19 = arith.truncf %18 : vector<128x128xf32> to vector<128x128xbf16>
    %c0_13 = arith.constant 0 : index
    %c0_14 = arith.constant 0 : index
    %20 = vector.load %arg3[%c0_13, %c0_14] : memref<8x128xbf16, #tpu.memory_space<vmem>>, vector<8x128xbf16>
    %cst_15 = arith.constant dense<0.000000e+00> : vector<8x128xf32>
    %21 = tpu.matmul %20, %19, %cst_15 {dimension_numbers = #tpu.dot_dimension_numbers<[1], [0], [0], [1], [0, 0, 1, 1], [], []>} : vector<8x128xbf16>, vector<128x128xbf16>, vector<8x128xf32> -> vector<8x128xf32>
    %c0_16 = arith.constant 0 : index
    %c0_17 = arith.constant 0 : index
    %22 = vector.load %arg4[%c0_16, %c0_17] : memref<8x128xbf16, #tpu.memory_space<vmem>>, vector<8x128xbf16>
    %cst_18 = arith.constant dense<0.000000e+00> : vector<8x128xf32>
    %23 = tpu.matmul %22, %19, %cst_18 {dimension_numbers = #tpu.dot_dimension_numbers<[1], [0], [0], [1], [0, 0, 1, 1], [], []>} : vector<8x128xbf16>, vector<128x128xbf16>, vector<8x128xf32> -> vector<8x128xf32>
    %cst_19 = arith.constant 0.999994993 : f32
    %24 = vector.broadcast %cst_19 : f32 to vector<8x128xf32>
    %25 = arith.mulf %21, %24 : vector<8x128xf32>
    %26 = arith.truncf %25 : vector<8x128xf32> to vector<8x128xbf16>
    %27 = arith.truncf %23 : vector<8x128xf32> to vector<8x128xbf16>
    %c0_20 = arith.constant 0 : index
    %c0_21 = arith.constant 0 : index
    %28 = vector.load %arg5[%c0_20, %c0_21] : memref<128x1024xbf16, #tpu.memory_space<vmem>>, vector<128x1024xbf16>
    %cst_22 = arith.constant dense<0.000000e+00> : vector<8x1024xf32>
    %29 = tpu.matmul %26, %28, %cst_22 {dimension_numbers = #tpu.dot_dimension_numbers<[1], [0], [0], [1], [0, 0, 1, 1], [], []>} : vector<8x128xbf16>, vector<128x1024xbf16>, vector<8x1024xf32> -> vector<8x1024xf32>
    %c0_23 = arith.constant 0 : index
    %c0_24 = arith.constant 0 : index
    %30 = vector.load %arg6[%c0_23, %c0_24] : memref<128x1024xbf16, #tpu.memory_space<vmem>>, vector<128x1024xbf16>
    %cst_25 = arith.constant dense<0.000000e+00> : vector<8x1024xf32>
    %31 = tpu.matmul %27, %30, %cst_25 {dimension_numbers = #tpu.dot_dimension_numbers<[1], [0], [0], [1], [0, 0, 1, 1], [], []>} : vector<8x128xbf16>, vector<128x1024xbf16>, vector<8x1024xf32> -> vector<8x1024xf32>
    %32 = arith.mulf %29, %31 : vector<8x1024xf32>
    %33 = arith.truncf %32 : vector<8x1024xf32> to vector<8x1024xbf16>
    %c0_26 = arith.constant 0 : index
    %c0_27 = arith.constant 0 : index
    %34 = vector.load %arg7[%c0_26, %c0_27] : memref<1024x128xbf16, #tpu.memory_space<vmem>>, vector<1024x128xbf16>
    %cst_28 = arith.constant dense<0.000000e+00> : vector<8x128xf32>
    %35 = tpu.matmul %33, %34, %cst_28 {dimension_numbers = #tpu.dot_dimension_numbers<[1], [0], [0], [1], [0, 0, 1, 1], [], []>} : vector<8x1024xbf16>, vector<1024x128xbf16>, vector<8x128xf32> -> vector<8x128xf32>
    %cst_29 = arith.constant 0.999994993 : f32
    %36 = vector.broadcast %cst_29 : f32 to vector<8x128xf32>
    %37 = arith.mulf %35, %36 : vector<8x128xf32>
    %cst_30 = arith.constant 0.000000e+00 : f32
    %38 = vector.broadcast %cst_30 : f32 to vector<8x128xf32>
    %39 = arith.cmpf ogt, %37, %38 : vector<8x128xf32>
    %cst_31 = arith.constant 0.00999999977 : f32
    %40 = vector.broadcast %cst_31 : f32 to vector<8x128xf32>
    %41 = arith.mulf %40, %37 : vector<8x128xf32>
    %42 = arith.select %39, %37, %41 : vector<8x128xi1>, vector<8x128xf32>
    %43 = arith.truncf %42 : vector<8x128xf32> to vector<8x128xbf16>
    %cst_32 = arith.constant dense<0.000000e+00> : vector<8x128xf32>
    %44 = tpu.matmul %43, %19, %cst_32 {dimension_numbers = #tpu.dot_dimension_numbers<[1], [1], [0], [0], [0, 0, 1, 0], [], []>} : vector<8x128xbf16>, vector<128x128xbf16>, vector<8x128xf32> -> vector<8x128xf32>
    %45 = arith.negf %44 : vector<8x128xf32>
    %46 = math.exp %45 : vector<8x128xf32>
    %cst_33 = arith.constant 1.000000e+00 : f32
    %47 = vector.broadcast %cst_33 : f32 to vector<8x128xf32>
    %48 = arith.addf %47, %46 : vector<8x128xf32>
    %49 = arith.divf %47, %48 : vector<8x128xf32>
    %c0_34 = arith.constant 0 : index
    %c0_35 = arith.constant 0 : index
    %50 = vector.load %arg8[%c0_34, %c0_35] : memref<8x128xf32, #tpu.memory_space<vmem>>, vector<8x128xf32>
    tpu.vector_store %arg8[%c0_34, %c0_35], %49 {strides = array<i32>} : memref<8x128xf32, #tpu.memory_space<vmem>>, vector<8x128xf32>,
    return
  }
}

</mosaic_0001>

<bundles_post_ra>
// kernel: tpu_custom_call.1
= control target key start
LH: loop header
LB: loop body
LE: loop exit
PB: predicated region body
PF: predicated region fallthrough
CT: control target
= control target key end

     0   :  { %13 = vsyncpa [#allocation3], 0  ;;  %s3984_s0 = inlined_call_operand.hbm [shape: bf16[128,128], index: 0, kind: input, shape index: {}]   ;;  %s3985_s1 = inlined_call_operand.hbm [shape: bf16[128,128], index: 1, kind: input, shape index: {}]   ;;  %s3986_s2 = inlined_call_operand.hbm [shape: bf16[2,128,128], index: 2, kind: input, shape index: {}]   ;;  %s3987_s3 = inlined_call_operand.vmem [shape: bf16[8,128], index: 3, kind: input, shape index: {}]   ;;  %s3988_s4 = inlined_call_operand.hbm [shape: bf16[8,128], index: 4, kind: input, shape index: {}]   ;;  %s3989_s5 = inlined_call_operand.hbm [shape: bf16[128,1024], index: 5, kind: input, shape index: {}]   ;;  %s3990_s6 = inlined_call_operand.hbm [shape: bf16[128,1024], index: 6, kind: input, shape index: {}]   ;;  %s3991_s7 = inlined_call_operand.hbm [shape: bf16[1024,128], index: 7, kind: input, shape index: {}]   ;;  %s3992_s8 = inlined_call_operand.hbm [shape: f32[8,128], index: 8, kind: output, shape index: {}]  }
   0x1   :  { %14 = vsyncpa [#allocation6], 0 }
   0x2   :  { %15 = vsyncpa [#allocation9], 0 }
   0x3   :  { %16 = vsyncpa [#allocation12], 0 }
   0x4   :  { %17 = vsyncpa [#allocation4], 0  ;;  %s3745_s27 = smov [#allocation5]   ;;  %s3746_s29 = smov [#allocation8]  }
   0x5   :  { %s35_s28 = sshll.u32 %s3745_s27, 4  ;;  %s62_s30 = sshll.u32 %s3746_s29, 4  ;;  %s36_s28 = int_to_ptr.vmem [resolvable:$true] %s35_s28  ;;  %s63_s30 = int_to_ptr.vmem [resolvable:$true] %s62_s30 }
   0x6   :  { %s3583_s9 = scalar_lea.vmem %s36_s28, 1024  ;;  %p3588_p1 = scmp.lt.s32.totalorder %s36_s28, %s36_s28 }
   0x7   :  { %p3584_p0 = scmp.ne.s32.totalorder %s36_s28, %s3583_s9  ;;  %p3589_p2 = scmp.lt.s32.totalorder %s3583_s9, %s3583_s9 }
   0x9   :  { %p3590_p3 = por %p3589_p2, %p3588_p1 }
   0xb   :  { %p3591_p4 = pnand %p3590_p3, %p3584_p0 }
   0xd   :  { %3594 = shalt.err (!%p3591_p4)
}
   0xe   :  { %s3747_s10 = smov 64   ;;  %s3748_s11 = smov 4  }
   0xf   :  { %41 = dma.hbm_to_vmem [thread:$0]  %s3985_s1, 1024, %s36_s28, [#allocation6], %s3747_s10, %s3747_s10, %s3748_s11  }
  0x10   :  { %s3603_s14 = scalar_lea.vmem %s63_s30, 64  ;;  %p3608_p6 = scmp.lt.s32.totalorder %s63_s30, %s63_s30 }
  0x11   :  { %p3604_p5 = scmp.ne.s32.totalorder %s63_s30, %s3603_s14  ;;  %p3609_p7 = scmp.lt.s32.totalorder %s3603_s14, %s3603_s14 }
  0x13   :  { %p3610_p8 = por %p3609_p7, %p3608_p6 }
  0x15   :  { %p3611_p9 = pnand %p3610_p8, %p3604_p5 }
  0x17   :  { %3614 = shalt.err (!%p3611_p9)
}
  0x18   :  { %65 = dma.hbm_to_vmem [thread:$0]  %s3988_s4, 64, %s63_s30, [#allocation9]  }
  0x19   :  { %s3749_s17 = smov [#allocation11]   ;;  %s3750_s19 = smov [#allocation2]  }
  0x1a   :  { %s83_s18 = sshll.u32 %s3749_s17, 4  ;;  %s23_s20 = sshll.u32 %s3750_s19, 4  ;;  %s84_s18 = int_to_ptr.vmem [resolvable:$true] %s83_s18  ;;  %s24_s20 = int_to_ptr.vmem [resolvable:$true] %s23_s20 }
  0x1b   :  { %s3623_s21 = scalar_lea.vmem %s84_s18, 8192  ;;  %p3628_p11 = scmp.lt.s32.totalorder %s84_s18, %s84_s18 }
  0x1c   :  { %p3624_p10 = scmp.ne.s32.totalorder %s84_s18, %s3623_s21  ;;  %p3629_p12 = scmp.lt.s32.totalorder %s3623_s21, %s3623_s21 }
  0x1e   :  { %p3630_p13 = por %p3629_p12, %p3628_p11 }
  0x20   :  { %p3631_p0 = pnand %p3630_p13, %p3624_p10 }
  0x22   :  { %3634 = shalt.err (!%p3631_p0)
}
  0x23   :  { %s3751_s1 = smov 512   ;;  %s3752_s22 = smov 32  }
  0x24   :  { %89 = dma.hbm_to_vmem [thread:$0]  %s3990_s6, 8192, %s84_s18, [#allocation12], %s3751_s1, %s3751_s1, %s3752_s22  }
  0x25   :  { %s3643_s24 = scalar_lea.vmem %s24_s20, 1024  ;;  %p3648_p2 = scmp.lt.s32.totalorder %s24_s20, %s24_s20 }
  0x26   :  { %p3644_p1 = scmp.ne.s32.totalorder %s24_s20, %s3643_s24  ;;  %p3649_p3 = scmp.lt.s32.totalorder %s3643_s24, %s3643_s24 }
  0x28   :  { %p3650_p4 = por %p3649_p3, %p3648_p2 }
  0x2a   :  { %p3651_p5 = pnand %p3650_p4, %p3644_p1 }
  0x2c   :  { %3654 = shalt.err (!%p3651_p5)
}
  0x2d   :  { %29 = dma.hbm_to_vmem [thread:$0]  %s3984_s0, 1024, %s24_s20, [#allocation3], %s3747_s10, %s3747_s10, %s3748_s11  }
  0x2e   :  { %s3753_s27 = smov [#allocation7]   ;;  %s3754_s29 = smov [#allocation10]  }
  0x2f   :  { %s47_s28 = sshll.u32 %s3753_s27, 4  ;;  %s71_s30 = sshll.u32 %s3754_s29, 4  ;;  %s48_s28 = int_to_ptr.vmem [resolvable:$true] %s47_s28  ;;  %s72_s30 = int_to_ptr.vmem [resolvable:$true] %s71_s30 }
  0x30   :  { %s3663_s6 = scalar_lea.vmem %s48_s28, 2048  ;;  %p3668_p7 = scmp.lt.s32.totalorder %s48_s28, %s48_s28 }
  0x31   :  { %p3664_p6 = scmp.ne.s32.totalorder %s48_s28, %s3663_s6  ;;  %p3669_p8 = scmp.lt.s32.totalorder %s3663_s6, %s3663_s6 }
  0x33   :  { %p3670_p9 = por %p3669_p8, %p3668_p7 }
  0x35   :  { %p3671_p10 = pnand %p3670_p9, %p3664_p6 }
  0x37   :  { %3674 = shalt.err (!%p3671_p10)
}
  0x38   :  { %53 = dma.hbm_to_vmem [thread:$0]  %s3986_s2, 2048, %s48_s28, [#allocation6], %s3747_s10, %s3747_s10, %s3748_s11  }
  0x39   :  { %s3683_s0 = scalar_lea.vmem %s72_s30, 8192  ;;  %p3688_p12 = scmp.lt.s32.totalorder %s72_s30, %s72_s30 }
  0x3a   :  { %p3684_p11 = scmp.ne.s32.totalorder %s72_s30, %s3683_s0  ;;  %p3689_p13 = scmp.lt.s32.totalorder %s3683_s0, %s3683_s0 }
  0x3c   :  { %p3690_p0 = por %p3689_p13, %p3688_p12 }
  0x3e   :  { %p3691_p1 = pnand %p3690_p0, %p3684_p11 }
  0x40   :  { %3694 = shalt.err (!%p3691_p1)
}
  0x41   :  { %77 = dma.hbm_to_vmem [thread:$0]  %s3989_s5, 8192, %s72_s30, [#allocation9], %s3751_s1, %s3751_s1, %s3752_s22  }
  0x42   :  { %s3755_s15 = smov [#allocation13]  }
  0x43   :  { %s95_s16 = sshll.u32 %s3755_s15, 4  ;;  %s96_s16 = int_to_ptr.vmem [resolvable:$true] %s95_s16 }
  0x44   :  { %s3703_s17 = scalar_lea.vmem %s96_s16, 8192  ;;  %p3708_p3 = scmp.lt.s32.totalorder %s96_s16, %s96_s16 }
  0x45   :  { %p3704_p2 = scmp.ne.s32.totalorder %s96_s16, %s3703_s17  ;;  %p3709_p4 = scmp.lt.s32.totalorder %s3703_s17, %s3703_s17 }
  0x47   :  { %p3710_p5 = por %p3709_p4, %p3708_p3 }
  0x49   :  { %p3711_p6 = pnand %p3710_p5, %p3704_p2 }
  0x4b   :  { %3714 = shalt.err (!%p3711_p6)
}
  0x4c   :  { %101 = dma.hbm_to_vmem [thread:$0]  %s3991_s7, 8192, %s96_s16, [#allocation12], %s3747_s10, %s3747_s10, %s3748_s11  }
  0x4d   :  { %3735 = dma.done.wait [#allocation3], 1024  }
  0x4e   :  { %3736 = vsyncadd [#allocation3], 4294966272 }
  0x4f   :  { %3737 = dma.done.wait [#allocation6], 3072  }
  0x50   :  { %3738 = vsyncadd [#allocation6], 4294964224 }
  0x51   :  { %3739 = dma.done.wait [#allocation9], 8256  }
  0x52   :  { %3740 = vsyncadd [#allocation9], 4294959040 }
  0x53   :  { %3741 = dma.done.wait [#allocation12], 16384  }
  0x54   :  { %3742 = vsyncadd [#allocation12], 4294950912  ;;  %v3411_v0 = vld [vmem:[#allocation7 + $0x38] sm:$0xff]   ;;  %v3412_v1 = vld [vmem:[#allocation7 + $0x30] sm:$0xff]   ;;  %vm3757_vm0 = vmmov 0  }
  0x55   :  { %3208 = vmatprep.subr.bf16.mxu1 %v3411_v0  ;;  %v3413_v2 = vld [vmem:[#allocation7 + $0x28] sm:$0xff]   ;;  %v3414_v3 = vld [vmem:[#allocation7 + $0x20] sm:$0xff]   ;;  %v3415_v5 = vld [vmem:[#allocation7 + $0x18] sm:$0xff]  }
  0x56   :  { %3209 = vmatpush3.bf16.msra.mxu1 %v3411_v0  ;;  %v3419_v4 = vld [vmem:[#allocation2] sm:$0xff]   ;;  %v3416_v6 = vld [vmem:[#allocation7 + $0x10] sm:$0xff]   ;;  %v3417_v7 = vld [vmem:[#allocation7 + $0x8] sm:$0xff]  }
  0x57   :  { %3210 = vmatprep.subr.bf16.mxu1 %v3412_v1  ;;  %3224 = vmatprep.mubr.bf16.mxu1 %v3419_v4  ;;  %v3418_v8 = vld [vmem:[#allocation7] sm:$0xff]   ;;  %v3420_v9 = vld [vmem:[#allocation2 + $0x8] sm:$0xff]   ;;  %v3421_v10 = vld [vmem:[#allocation2 + $0x10] sm:$0xff]  }
  0x58   :  { %v3422_v11 = vld [vmem:[#allocation2 + $0x18] sm:$0xff]   ;;  %v3423_v12 = vld [vmem:[#allocation2 + $0x20] sm:$0xff]   ;;  %v3424_v13 = vld [vmem:[#allocation2 + $0x28] sm:$0xff]  }
  0x59   :  { %v3425_v14 = vld [vmem:[#allocation2 + $0x30] sm:$0xff]   ;;  %v3426_v15 = vld [vmem:[#allocation2 + $0x38] sm:$0xff]   ;;  %v3427_v16 = vld [vmem:[#allocation5] sm:$0xff]  }
  0x5a   :  { %3211 = vmatpush3.bf16.msra.mxu1 %v3412_v1  ;;  %v3435_v17 = vld [vmem:[#allocation7 + $0x78] sm:$0xff]   ;;  %v3436_v18 = vld [vmem:[#allocation7 + $0x70] sm:$0xff]   ;;  %v3844_v43 = vld [vmem:[#allocation5 + $0x8] sm:$0xff]  }
  0x5b   :  { %3212 = vmatprep.subr.bf16.mxu1 %v3413_v2  ;;  %3272 = vmatprep.subr.bf16.mxu0 %v3435_v17  ;;  %v3846_v44 = vld [vmem:[#allocation5 + $0x10] sm:$0xff]   ;;  %v3850_v45 = vld [vmem:[#allocation5 + $0x18] sm:$0xff]   ;;  %v3852_v46 = vld [vmem:[#allocation5 + $0x20] sm:$0xff]  }
  0x5c   :  { %3273 = vmatpush3.bf16.msra.mxu0 %v3435_v17  ;;  %v3856_v47 = vld [vmem:[#allocation5 + $0x28] sm:$0xff]   ;;  %v3858_v48 = vld [vmem:[#allocation5 + $0x30] sm:$0xff]   ;;  %v3862_v49 = vld [vmem:[#allocation5 + $0x38] sm:$0xff]  }
  0x5d   :  { %3274 = vmatprep.subr.bf16.mxu0 %v3436_v18  ;;  %v3437_v50 = vld [vmem:[#allocation7 + $0x68] sm:$0xff]   ;;  %v3438_v51 = vld [vmem:[#allocation7 + $0x60] sm:$0xff]   ;;  %v3439_v52 = vld [vmem:[#allocation7 + $0x58] sm:$0xff]  }
  0x5e   :  { %3213 = vmatpush3.bf16.msra.mxu1 %v3413_v2  ;;  %v3440_v53 = vld [vmem:[#allocation7 + $0x50] sm:$0xff]   ;;  %v3441_v54 = vld [vmem:[#allocation7 + $0x48] sm:$0xff]   ;;  %v3442_v55 = vld [vmem:[#allocation7 + $0x40] sm:$0xff]  }
  0x5f   :  { %3214 = vmatprep.subr.bf16.mxu1 %v3414_v3 }
  0x60   :  { %3275 = vmatpush3.bf16.msra.mxu0 %v3436_v18 }
  0x61   :  { %3276 = vmatprep.subr.bf16.mxu0 %v3437_v50 }
  0x62   :  { %3215 = vmatpush3.bf16.msra.mxu1 %v3414_v3 }
  0x63   :  { %3216 = vmatprep.subr.bf16.mxu1 %v3415_v5 }
  0x64   :  { %3277 = vmatpush3.bf16.msra.mxu0 %v3437_v50 }
  0x65   :  { %3278 = vmatprep.subr.bf16.mxu0 %v3438_v51 }
  0x66   :  { %3217 = vmatpush3.bf16.msra.mxu1 %v3415_v5 }
  0x67   :  { %3218 = vmatprep.subr.bf16.mxu1 %v3416_v6 }
  0x68   :  { %3279 = vmatpush3.bf16.msra.mxu0 %v3438_v51 }
  0x69   :  { %3280 = vmatprep.subr.bf16.mxu0 %v3439_v52 }
  0x6a   :  { %3219 = vmatpush3.bf16.msra.mxu1 %v3416_v6 }
  0x6b   :  { %3220 = vmatprep.subr.bf16.mxu1 %v3417_v7 }
  0x6c   :  { %3281 = vmatpush3.bf16.msra.mxu0 %v3439_v52 }
  0x6d   :  { %3282 = vmatprep.subr.bf16.mxu0 %v3440_v53 }
  0x6e   :  { %3221 = vmatpush3.bf16.msra.mxu1 %v3417_v7 }
  0x6f   :  { %3222 = vmatprep.subr.bf16.mxu1 %v3418_v8 }
  0x70   :  { %3283 = vmatpush3.bf16.msra.mxu0 %v3440_v53 }
  0x71   :  { %3284 = vmatprep.subr.bf16.mxu0 %v3441_v54 }
  0x72   :  { %3223 = vmatpush3.bf16.msra.mxu1 %v3418_v8 }
  0x74   :  { %3285 = vmatpush3.bf16.msra.mxu0 %v3441_v54 }
  0x75   :  { %3225 = vmatmul.mubr.bf16.vlgmr.msra.gmra.mxu1 %v3420_v9  ;;  %3286 = vmatprep.subr.bf16.mxu0 %v3442_v55 }
  0x76   :  { %3228 = vmatprep.mubr.bf16.mxu1 %v3421_v10 }
  0x78   :  { %3287 = vmatpush3.bf16.msra.mxu0 %v3442_v55 }
  0x7d   :  { %3229 = vmatmul.mubr.bf16.gmra.mxu1 %v3422_v11 }
  0x7e   :  { %3232 = vmatprep.mubr.bf16.mxu1 %v3423_v12 }
  0x85   :  { %3233 = vmatmul.mubr.bf16.gmra.mxu1 %v3424_v13 }
  0x86   :  { %3236 = vmatprep.mubr.bf16.mxu1 %v3425_v14 }
  0x8d   :  { %3237 = vmatmul.mubr.bf16.gmra.mxu1 %v3426_v15 }
  0x8e   :  { %3256 = vmatprep.mubr.bf16.mxu1 %v3427_v16 }
 0x135   :  { %v3226_v19 = vpop.f32.mrf.mxu1 }
 0x137   :  { %v302_v20 = vpop.f32.mrf.mxu1 }
 0x139   :  { %v3227_v21 = vpop.f32.mrf.mxu1 }
 0x13a   :  { %v366_v41 = vpack.c.bf16 %v3227_v21, %v3226_v19 }
 0x13b   :  { %v305_v22 = vpop.f32.mrf.mxu1 }
 0x13c   :  { %v365_v42 = vpack.c.bf16 %v305_v22, %v302_v20 }
 0x13d   :  { %v3230_v23 = vpop.f32.mrf.mxu1 }
 0x13f   :  { %v318_v24 = vpop.f32.mrf.mxu1 }
 0x141   :  { %v3231_v25 = vpop.f32.mrf.mxu1 }
 0x142   :  { %v368_v39 = vpack.c.bf16 %v3231_v25, %v3230_v23 }
 0x143   :  { %v321_v26 = vpop.f32.mrf.mxu1 }
 0x144   :  { %v367_v40 = vpack.c.bf16 %v321_v26, %v318_v24 }
 0x145   :  { %v3234_v27 = vpop.f32.mrf.mxu1 }
 0x147   :  { %v334_v28 = vpop.f32.mrf.mxu1 }
 0x149   :  { %v3235_v29 = vpop.f32.mrf.mxu1 }
 0x14a   :  { %v370_v37 = vpack.c.bf16 %v3235_v29, %v3234_v27 }
 0x14b   :  { %v337_v30 = vpop.f32.mrf.mxu1 }
 0x14c   :  { %v369_v38 = vpack.c.bf16 %v337_v30, %v334_v28 }
 0x14d   :  { %v3238_v31 = vpop.f32.mrf.mxu1 }
 0x14f   :  { %v350_v32 = vpop.f32.mrf.mxu1 }
 0x151   :  { %v3239_v33 = vpop.f32.mrf.mxu1 }
 0x152   :  { %v372_v34 = vpack.c.bf16 %v3239_v33, %v3238_v31 }
 0x153   :  { %v353_v35 = vpop.f32.mrf.mxu1 }
 0x154   :  { %v371_v36 = vpack.c.bf16 %v353_v35, %v350_v32  ;;  %3240 = vmatprep.subr.bf16.mxu1 %v372_v34 }
 0x155   :  { %3241 = vmatpush3.bf16.msra.mxu1 %v372_v34 }
 0x156   :  { %3242 = vmatprep.subr.bf16.mxu1 %v371_v36 }
 0x159   :  { %3243 = vmatpush3.bf16.msra.mxu1 %v371_v36 }
 0x15a   :  { %3244 = vmatprep.subr.bf16.mxu1 %v370_v37 }
 0x15d   :  { %3245 = vmatpush3.bf16.msra.mxu1 %v370_v37 }
 0x15e   :  { %3246 = vmatprep.subr.bf16.mxu1 %v369_v38 }
 0x161   :  { %3247 = vmatpush3.bf16.msra.mxu1 %v369_v38 }
 0x162   :  { %3248 = vmatprep.subr.bf16.mxu1 %v368_v39 }
 0x165   :  { %3249 = vmatpush3.bf16.msra.mxu1 %v368_v39 }
 0x166   :  { %3250 = vmatprep.subr.bf16.mxu1 %v367_v40 }
 0x169   :  { %3251 = vmatpush3.bf16.msra.mxu1 %v367_v40 }
 0x16a   :  { %3252 = vmatprep.subr.bf16.mxu1 %v366_v41 }
 0x16d   :  { %3253 = vmatpush3.bf16.msra.mxu1 %v366_v41 }
 0x16e   :  { %3254 = vmatprep.subr.bf16.mxu1 %v365_v42 }
 0x171   :  { %3255 = vmatpush3.bf16.msra.mxu1 %v365_v42 }
 0x174   :  { %3257 = vmatmul.mubr.bf16.vlgmr.msra.gmra.mxu1 %v3844_v43 }
 0x175   :  { %3260 = vmatprep.mubr.bf16.mxu1 %v3846_v44 }
 0x17c   :  { %3261 = vmatmul.mubr.bf16.gmra.mxu1 %v3850_v45 }
 0x17d   :  { %3264 = vmatprep.mubr.bf16.mxu1 %v3852_v46 }
 0x184   :  { %3265 = vmatmul.mubr.bf16.gmra.mxu1 %v3856_v47 }
 0x185   :  { %3268 = vmatprep.mubr.bf16.mxu1 %v3858_v48 }
 0x18c   :  { %3269 = vmatmul.mubr.bf16.gmra.mxu1 %v3862_v49 }
 0x18d   :  { %3320 = vmatprep.mubr.bf16.mxu1 %v3427_v16 }
 0x234   :  { %v3258_v56 = vpop.f32.mrf.mxu1 }
 0x235   :  { %v520_v61 = vmul.f32 0.999995, %v3258_v56 }
 0x236   :  { %v455_v57 = vpop.f32.mrf.mxu1 }
 0x237   :  { %v518_v58 = vmul.f32 0.999995, %v455_v57 }
 0x238   :  { %v3259_v59 = vpop.f32.mrf.mxu1 }
 0x239   :  { %v521_v60 = vmul.f32 0.999995, %v3259_v59  ;;  %3507 = vtanh.f32 %v518_v58 }
 0x23a   :  { %v458_v62 = vpop.f32.mrf.mxu1 }
 0x23b   :  { %v519_v63 = vmul.f32 0.999995, %v458_v62  ;;  %3509 = vtanh.f32 %v521_v60 }
 0x23c   :  { %v3262_v0 = vpop.f32.mrf.mxu1 }
 0x23d   :  { %3511 = vtanh.f32 %v519_v63  ;;  %v524_v5 = vmul.f32 0.999995, %v3262_v0 }
 0x23e   :  { %3513 = vtanh.f32 %v520_v61  ;;  %v471_v1 = vpop.f32.mrf.mxu1 }
 0x23f   :  { %v522_v2 = vmul.f32 0.999995, %v471_v1 }
 0x240   :  { %v3263_v3 = vpop.f32.mrf.mxu1 }
 0x241   :  { %v525_v4 = vmul.f32 0.999995, %v3263_v3  ;;  %3515 = vtanh.f32 %v522_v2 }
 0x242   :  { %v474_v6 = vpop.f32.mrf.mxu1 }
 0x243   :  { %v523_v7 = vmul.f32 0.999995, %v474_v6  ;;  %3517 = vtanh.f32 %v525_v4 }
 0x244   :  { %v3266_v8 = vpop.f32.mrf.mxu1 }
 0x245   :  { %3519 = vtanh.f32 %v523_v7  ;;  %v528_v16 = vmul.f32 0.999995, %v3266_v8 }
 0x246   :  { %3521 = vtanh.f32 %v524_v5  ;;  %v487_v9 = vpop.f32.mrf.mxu1  ;;  %v3508_v11 = vpop.eup %3507 }
 0x247   :  { %v526_v10 = vmul.f32 0.999995, %v487_v9 }
 0x248   :  { %v3267_v12 = vpop.f32.mrf.mxu1  ;;  %v3510_v13 = vpop.eup %3509 }
 0x249   :  { %v529_v14 = vmul.f32 0.999995, %v3267_v12  ;;  %3523 = vtanh.f32 %v526_v10 }
 0x24a   :  { %v3512_v15 = vpop.eup %3511  ;;  %v490_v17 = vpop.f32.mrf.mxu1 }
 0x24b   :  { %v3514_v18 = vpop.eup %3513  ;;  %v527_v19 = vmul.f32 0.999995, %v490_v17  ;;  %v550_v20 = vpack.c.bf16 %v3512_v15, %v3508_v11  ;;  %3525 = vtanh.f32 %v529_v14  ;;  %v3756_v15 = vmov 0.0  }
 0x24c   :  { %v3270_v21 = vpop.f32.mrf.mxu1  ;;  %v551_v22 = vpack.c.bf16 %v3510_v13, %v3514_v18  ;;  %3336 = vmatprep.subr.bf16.mxu0 %v3756_v15 }
 0x24d   :  { %3527 = vtanh.f32 %v527_v19  ;;  %3288 = vmatprep.mubr.bf16.mxu0 %v550_v20  ;;  %v532_v30 = vmul.f32 0.999995, %v3270_v21 }
 0x24e   :  { %3529 = vtanh.f32 %v528_v16  ;;  %v503_v23 = vpop.f32.mrf.mxu1  ;;  %3289 = vmatmul.mubr.bf16.vlgmr.msra.gmra.mxu0 %v551_v22  ;;  %v3516_v25 = vpop.eup %3515 }
 0x24f   :  { %v530_v24 = vmul.f32 0.999995, %v503_v23 }
 0x250   :  { %v3271_v26 = vpop.f32.mrf.mxu1  ;;  %v3518_v27 = vpop.eup %3517 }
 0x251   :  { %v533_v28 = vmul.f32 0.999995, %v3271_v26  ;;  %3531 = vtanh.f32 %v530_v24 }
 0x252   :  { %v3520_v29 = vpop.eup %3519  ;;  %v506_v31 = vpop.f32.mrf.mxu1 }
 0x253   :  { %v3522_v32 = vpop.eup %3521  ;;  %v531_v33 = vmul.f32 0.999995, %v506_v31  ;;  %v552_v34 = vpack.c.bf16 %v3520_v29, %v3516_v25  ;;  %3533 = vtanh.f32 %v533_v28 }
 0x254   :  { %v553_v35 = vpack.c.bf16 %v3518_v27, %v3522_v32 }
 0x255   :  { %3535 = vtanh.f32 %v531_v33  ;;  %3292 = vmatprep.mubr.bf16.mxu0 %v552_v34 }
 0x256   :  { %3537 = vtanh.f32 %v532_v30  ;;  %3293 = vmatmul.mubr.bf16.gmra.mxu0 %v553_v35  ;;  %v3524_v36 = vpop.eup %3523 }
 0x258   :  { %v3526_v37 = vpop.eup %3525 }
 0x25a   :  { %v3528_v38 = vpop.eup %3527 }
 0x25b   :  { %v3530_v39 = vpop.eup %3529  ;;  %v554_v40 = vpack.c.bf16 %v3528_v38, %v3524_v36 }
 0x25c   :  { %v555_v41 = vpack.c.bf16 %v3526_v37, %v3530_v39 }
 0x25d   :  { %3296 = vmatprep.mubr.bf16.mxu0 %v554_v40 }
 0x25e   :  { %3297 = vmatmul.mubr.bf16.gmra.mxu0 %v555_v41  ;;  %v3532_v42 = vpop.eup %3531 }
 0x260   :  { %v3534_v50 = vpop.eup %3533 }
 0x262   :  { %v3536_v51 = vpop.eup %3535 }
 0x263   :  { %v3538_v52 = vpop.eup %3537  ;;  %v556_v53 = vpack.c.bf16 %v3536_v51, %v3532_v42 }
 0x264   :  { %v557_v54 = vpack.c.bf16 %v3534_v50, %v3538_v52 }
 0x265   :  { %3300 = vmatprep.mubr.bf16.mxu0 %v556_v53 }
 0x266   :  { %3301 = vmatmul.mubr.bf16.gmra.mxu0 %v557_v54 }
 0x267   :  { %3352 = vmatprep.mubr.msk.bf16.mxu0 %vm3757_vm0, %v3756_v15 }
 0x30e   :  { %v3290_v55 = vpop.f32.mrf.mxu0 }
 0x310   :  { %v657_v56 = vpop.f32.mrf.mxu0 }
 0x312   :  { %v3291_v57 = vpop.f32.mrf.mxu0 }
 0x313   :  { %v721_v13 = vpack.c.bf16 %v3291_v57, %v3290_v55 }
 0x314   :  { %v660_v58 = vpop.f32.mrf.mxu0 }
 0x315   :  { %v720_v14 = vpack.c.bf16 %v660_v58, %v657_v56 }
 0x316   :  { %v3294_v59 = vpop.f32.mrf.mxu0 }
 0x318   :  { %v673_v60 = vpop.f32.mrf.mxu0 }
 0x31a   :  { %v3295_v61 = vpop.f32.mrf.mxu0 }
 0x31b   :  { %v723_v11 = vpack.c.bf16 %v3295_v61, %v3294_v59 }
 0x31c   :  { %v676_v62 = vpop.f32.mrf.mxu0 }
 0x31d   :  { %v722_v12 = vpack.c.bf16 %v676_v62, %v673_v60 }
 0x31e   :  { %v3298_v63 = vpop.f32.mrf.mxu0 }
 0x320   :  { %v689_v0 = vpop.f32.mrf.mxu0 }
 0x322   :  { %v3299_v1 = vpop.f32.mrf.mxu0 }
 0x323   :  { %v725_v9 = vpack.c.bf16 %v3299_v1, %v3298_v63 }
 0x324   :  { %v692_v2 = vpop.f32.mrf.mxu0 }
 0x325   :  { %v724_v10 = vpack.c.bf16 %v692_v2, %v689_v0 }
 0x326   :  { %v3302_v3 = vpop.f32.mrf.mxu0 }
 0x328   :  { %v705_v4 = vpop.f32.mrf.mxu0 }
 0x32a   :  { %v3303_v5 = vpop.f32.mrf.mxu0 }
 0x32b   :  { %v727_v6 = vpack.c.bf16 %v3303_v5, %v3302_v3 }
 0x32c   :  { %v708_v7 = vpop.f32.mrf.mxu0 }
 0x32d   :  { %v726_v8 = vpack.c.bf16 %v708_v7, %v705_v4  ;;  %3304 = vmatprep.subr.bf16.mxu1 %v727_v6  ;;  %v1006_v4 = vld [vmem:[#allocation10 + $0x1c0] sm:$0xff]  ;;  %v1007_v7 = vld [vmem:[#allocation10 + $0x1c8] sm:$0xff] }
 0x32e   :  { %3305 = vmatpush3.bf16.msra.mxu1 %v727_v6  ;;  %v1010_v6 = vld [vmem:[#allocation10 + $0x1e0] sm:$0xff] }
 0x32f   :  { %3306 = vmatprep.subr.bf16.mxu1 %v726_v8 }
 0x332   :  { %3307 = vmatpush3.bf16.msra.mxu1 %v726_v8  ;;  %v1011_v8 = vld [vmem:[#allocation10 + $0x1e8] sm:$0xff] }
 0x333   :  { %3308 = vmatprep.subr.bf16.mxu1 %v725_v9 }
 0x336   :  { %3309 = vmatpush3.bf16.msra.mxu1 %v725_v9 }
 0x337   :  { %3310 = vmatprep.subr.bf16.mxu1 %v724_v10 }
 0x33a   :  { %3311 = vmatpush3.bf16.msra.mxu1 %v724_v10 }
 0x33b   :  { %3312 = vmatprep.subr.bf16.mxu1 %v723_v11 }
 0x33e   :  { %3313 = vmatpush3.bf16.msra.mxu1 %v723_v11  ;;  %v2893_v11 = vcombine.high %v1006_v4, %v1010_v6 }
 0x33f   :  { %3314 = vmatprep.subr.bf16.mxu1 %v722_v12 }
 0x342   :  { %3315 = vmatpush3.bf16.msra.mxu1 %v722_v12  ;;  %v2895_v12 = vcombine.high %v1007_v7, %v1011_v8 }
 0x343   :  { %3316 = vmatprep.subr.bf16.mxu1 %v721_v13 }
 0x346   :  { %3317 = vmatpush3.bf16.msra.mxu1 %v721_v13  ;;  %v998_v13 = vld [vmem:[#allocation10 + $0x180] sm:$0xff] }
 0x347   :  { %3318 = vmatprep.subr.bf16.mxu1 %v720_v14 }
 0x34a   :  { %3319 = vmatpush3.bf16.msra.mxu1 %v720_v14 }
 0x34b   :  { %3356 = vmatprep.subr.bf16.mxu1 %v3756_v15 }
 0x34d   :  { %3321 = vmatmul.mubr.bf16.vlgmr.msra.gmra.mxu1 %v3844_v43 }
 0x34e   :  { %3324 = vmatprep.mubr.bf16.mxu1 %v3846_v44 }
 0x355   :  { %3325 = vmatmul.mubr.bf16.gmra.mxu1 %v3850_v45 }
 0x356   :  { %3328 = vmatprep.mubr.bf16.mxu1 %v3852_v46 }
 0x35d   :  { %3329 = vmatmul.mubr.bf16.gmra.mxu1 %v3856_v47 }
 0x35e   :  { %3332 = vmatprep.mubr.bf16.mxu1 %v3858_v48 }
 0x365   :  { %3333 = vmatmul.mubr.bf16.gmra.mxu1 %v3862_v49 }
 0x366   :  { %3372 = vmatprep.mubr.msk.bf16.mxu1 %vm3757_vm0, %v3756_v15 }
 0x40d   :  { %v3322_v43 = vpop.f32.mrf.mxu1 }
 0x40e   :  { %v827_v52 = vmul.f32 0.999995, %v3322_v43  ;;  %v1002_v43 = vld [vmem:[#allocation10 + $0x1a0] sm:$0xff] }
 0x40f   :  { %v762_v44 = vpop.f32.mrf.mxu1 }
 0x410   :  { %v825_v57 = vmul.f32 0.999995, %v762_v44  ;;  %v999_v44 = vld [vmem:[#allocation10 + $0x188] sm:$0xff] }
 0x411   :  { %v3323_v45 = vpop.f32.mrf.mxu1 }
 0x412   :  { %v828_v42 = vmul.f32 0.999995, %v3323_v45  ;;  %v1003_v45 = vld [vmem:[#allocation10 + $0x1a8] sm:$0xff] }
 0x413   :  { %v765_v46 = vpop.f32.mrf.mxu1 }
 0x414   :  { %v826_v54 = vmul.f32 0.999995, %v765_v46  ;;  %v865_v46 = vld [vmem:[%s3987_s3] sm:$0xf]  ;;  %s3759_s3 = smov [#allocation14]  }
 0x415   :  { %v3326_v47 = vpop.f32.mrf.mxu1  ;;  %s2792_s10 = sshll.u32 %s3759_s3, 4  ;;  %s2793_s10 = int_to_ptr.vmem [resolvable:$true] %s2792_s10 }
 0x416   :  { %v831_v35 = vmul.f32 0.999995, %v3326_v47  ;;  %v906_v47 = vld [vmem:[#allocation8] sm:$0xf]  ;;  %s3715_s11 = scalar_lea.vmem %s2793_s10, 128  ;;  %p3720_p8 = scmp.lt.s32.totalorder %s2793_s10, %s2793_s10 }
 0x417   :  { %v778_v48 = vpop.f32.mrf.mxu1  ;;  %p3716_p7 = scmp.ne.s32.totalorder %s2793_s10, %s3715_s11  ;;  %p3721_p9 = scmp.lt.s32.totalorder %s3715_s11, %s3715_s11 }
 0x418   :  { %v829_v40 = vmul.f32 0.999995, %v778_v48  ;;  %v2892_v48 = vcombine.low %v1006_v4, %v1010_v6 }
 0x419   :  { %v3327_v16 = vpop.f32.mrf.mxu1  ;;  %p3722_p10 = por %p3721_p9, %p3720_p8 }
 0x41a   :  { %v832_v33 = vmul.f32 0.999995, %v3327_v16  ;;  %v2894_v16 = vcombine.low %v1007_v7, %v1011_v8 }
 0x41b   :  { %v781_v49 = vpop.f32.mrf.mxu1  ;;  %p3723_p11 = pnand %p3722_p10, %p3716_p7 }
 0x41c   :  { %v830_v37 = vmul.f32 0.999995, %v781_v49  ;;  %v2885_v49 = vcombine.high %v998_v13, %v1002_v43 }
 0x41d   :  { %v3330_v17 = vpop.f32.mrf.mxu1 }
 0x41e   :  { %v835_v30 = vmul.f32 0.999995, %v3330_v17  ;;  %v2887_v17 = vcombine.high %v999_v44, %v1003_v45 }
 0x41f   :  { %v794_v18 = vpop.f32.mrf.mxu1 }
 0x420   :  { %v833_v32 = vmul.f32 0.999995, %v794_v18  ;;  %v990_v18 = vld [vmem:[#allocation10 + $0x140] sm:$0xff] }
 0x421   :  { %v3331_v19 = vpop.f32.mrf.mxu1 }
 0x422   :  { %v836_v29 = vmul.f32 0.999995, %v3331_v19  ;;  %v994_v19 = vld [vmem:[#allocation10 + $0x160] sm:$0xff] }
 0x423   :  { %v797_v20 = vpop.f32.mrf.mxu1 }
 0x424   :  { %v834_v31 = vmul.f32 0.999995, %v797_v20  ;;  %v991_v20 = vld [vmem:[#allocation10 + $0x148] sm:$0xff] }
 0x425   :  { %v3334_v21 = vpop.f32.mrf.mxu1 }
 0x426   :  { %v839_v22 = vmul.f32 0.999995, %v3334_v21  ;;  %v995_v21 = vld [vmem:[#allocation10 + $0x168] sm:$0xff] }
 0x427   :  { %v810_v23 = vpop.f32.mrf.mxu1 }
 0x428   :  { %3539 = vtanh.f32 %v839_v22  ;;  %v837_v27 = vmul.f32 0.999995, %v810_v23  ;;  %v2884_v22 = vcombine.low %v998_v13, %v1002_v43  ;;  %v2886_v23 = vcombine.low %v999_v44, %v1003_v45  ;;  %v955_v43 = vld [vmem:[#allocation10 + $0x28] sm:$0xff] }
 0x429   :  { %v3335_v24 = vpop.f32.mrf.mxu1 }
 0x42a   :  { %v840_v25 = vmul.f32 0.999995, %v3335_v24  ;;  %v2877_v24 = vcombine.high %v990_v18, %v994_v19 }
 0x42b   :  { %v813_v26 = vpop.f32.mrf.mxu1 }
 0x42c   :  { %3541 = vtanh.f32 %v840_v25  ;;  %v838_v28 = vmul.f32 0.999995, %v813_v26  ;;  %v2879_v25 = vcombine.high %v991_v20, %v995_v21  ;;  %v982_v26 = vld [vmem:[#allocation10 + $0x100] sm:$0xff] }
 0x42e   :  { %3543 = vtanh.f32 %v838_v28  ;;  %v983_v28 = vld [vmem:[#allocation10 + $0x108] sm:$0xff] }
 0x42f   :  { %3545 = vtanh.f32 %v837_v27  ;;  %v986_v27 = vld [vmem:[#allocation10 + $0x120] sm:$0xff] }
 0x430   :  { %3547 = vtanh.f32 %v836_v29  ;;  %v987_v29 = vld [vmem:[#allocation10 + $0x128] sm:$0xff] }
 0x431   :  { %3549 = vtanh.f32 %v835_v30  ;;  %v2876_v30 = vcombine.low %v990_v18, %v994_v19 }
 0x432   :  { %3551 = vtanh.f32 %v834_v31  ;;  %v2878_v31 = vcombine.low %v991_v20, %v995_v21  ;;  %v3758_v21 = vmov 0  }
 0x433   :  { %3553 = vtanh.f32 %v833_v32  ;;  %v2869_v32 = vcombine.high %v982_v26, %v986_v27 }
 0x434   :  { %3555 = vtanh.f32 %v832_v33  ;;  %v2871_v33 = vcombine.high %v983_v28, %v987_v29 }
 0x435   :  { %v3540_v34 = vpop.eup %3539  ;;  %3557 = vtanh.f32 %v831_v35  ;;  %v978_v35 = vld [vmem:[#allocation10 + $0xe0] sm:$0xff] }
 0x436   :  { %3559 = vtanh.f32 %v830_v37  ;;  %v979_v37 = vld [vmem:[#allocation10 + $0xe8] sm:$0xff] }
 0x437   :  { %3561 = vtanh.f32 %v829_v40  ;;  %v2870_v40 = vcombine.low %v983_v28, %v987_v29 }
 0x438   :  { %3563 = vtanh.f32 %v828_v42 }
 0x439   :  { %v3542_v36 = vpop.eup %3541  ;;  %3565 = vtanh.f32 %v827_v52  ;;  %v970_v52 = vld [vmem:[#allocation10 + $0xa0] sm:$0xff] }
 0x43a   :  { %v3878_v38 = vpack.c.bf16 %v3542_v36, %v3540_v34  ;;  %3567 = vtanh.f32 %v826_v54  ;;  %v974_v34 = vld [vmem:[#allocation10 + $0xc0] sm:$0xff]  ;;  %v975_v36 = vld [vmem:[#allocation10 + $0xc8] sm:$0xff] }
 0x43b   :  { %v3544_v39 = vpop.eup %3543  ;;  %3569 = vtanh.f32 %v825_v57  ;;  %v2863_v42 = vcombine.high %v975_v36, %v979_v37  ;;  %v971_v54 = vld [vmem:[#allocation10 + $0xa8] sm:$0xff]  ;;  %v2862_v57 = vcombine.low %v975_v36, %v979_v37  ;;  %v996_v36 = vld [vmem:[#allocation10 + $0x170] sm:$0xff]  ;;  %v993_v37 = vld [vmem:[#allocation10 + $0x158] sm:$0xff] }
 0x43c   :  { %3337 = vmatpush3.bf16.msra.mxu0 %v3878_v38  ;;  %3357 = vmatpush3.bf16.msra.mxu1 %v3878_v38  ;;  %v3546_v41 = vpop.eup %3545 }
 0x43d   :  { %3338 = vmatprep.subr.bf16.mxu0 %v3756_v15  ;;  %3358 = vmatprep.subr.bf16.mxu1 %v3756_v15  ;;  %v3884_v50 = vpack.c.bf16 %v3544_v39, %v3546_v41  ;;  %v3548_v51 = vpop.eup %3547  ;;  %v2868_v39 = vcombine.low %v982_v26, %v986_v27  ;;  %v2861_v41 = vcombine.high %v974_v34, %v978_v35  ;;  %v1005_v26 = vld [vmem:[#allocation10 + $0x1b8] sm:$0xff] }
 0x43e   :  { %v3550_v53 = vpop.eup %3549 }
 0x43f   :  { %v3890_v55 = vpack.c.bf16 %v3548_v51, %v3550_v53  ;;  %v3552_v56 = vpop.eup %3551  ;;  %v966_v51 = vld [vmem:[#allocation10 + $0x80] sm:$0xff]  ;;  %v967_v53 = vld [vmem:[#allocation10 + $0x88] sm:$0xff] }
 0x440   :  { %3339 = vmatpush3.bf16.msra.mxu0 %v3884_v50  ;;  %3359 = vmatpush3.bf16.msra.mxu1 %v3884_v50  ;;  %v3554_v58 = vpop.eup %3553  ;;  %v2854_v4 = vcombine.low %v967_v53, %v971_v54 }
 0x441   :  { %3340 = vmatprep.subr.bf16.mxu0 %v3756_v15  ;;  %3360 = vmatprep.subr.bf16.mxu1 %v3756_v15  ;;  %v3896_v59 = vpack.c.bf16 %v3552_v56, %v3554_v58  ;;  %v3556_v60 = vpop.eup %3555  ;;  %v2860_v56 = vcombine.low %v974_v34, %v978_v35  ;;  %v2853_v58 = vcombine.high %v966_v51, %v970_v52  ;;  %v992_v34 = vld [vmem:[#allocation10 + $0x150] sm:$0xff] }
 0x442   :  { %v3558_v61 = vpop.eup %3557 }
 0x443   :  { %v3902_v62 = vpack.c.bf16 %v3556_v60, %v3558_v61  ;;  %v3560_v63 = vpop.eup %3559  ;;  %v2855_v60 = vcombine.high %v967_v53, %v971_v54  ;;  %v958_v61 = vld [vmem:[#allocation10 + $0x40] sm:$0xff]  ;;  %v2881_v53 = vcombine.high %v992_v34, %v996_v36 }
 0x444   :  { %3341 = vmatpush3.bf16.msra.mxu0 %v3890_v55  ;;  %3361 = vmatpush3.bf16.msra.mxu1 %v3890_v55  ;;  %v3562_v0 = vpop.eup %3561 }
 0x445   :  { %3342 = vmatprep.subr.bf16.mxu0 %v3756_v15  ;;  %3362 = vmatprep.subr.bf16.mxu1 %v3756_v15  ;;  %v3908_v1 = vpack.c.bf16 %v3560_v63, %v3562_v0  ;;  %v3564_v2 = vpop.eup %3563  ;;  %v962_v63 = vld [vmem:[#allocation10 + $0x60] sm:$0xff]  ;;  %v959_v0 = vld [vmem:[#allocation10 + $0x48] sm:$0xff] }
 0x446   :  { %v3566_v3 = vpop.eup %3565  ;;  %v2845_v6 = vcombine.high %v958_v61, %v962_v63  ;;  %v2844_v8 = vcombine.low %v958_v61, %v962_v63  ;;  %v2880_v61 = vcombine.low %v992_v34, %v996_v36  ;;  %v1554_v34 = vld [vmem:[#allocation11 + $0x1c0] sm:$0xff]  ;;  %v1555_v36 = vld [vmem:[#allocation11 + $0x1c8] sm:$0xff] }
 0x447   :  { %v3914_v5 = vpack.c.bf16 %v3564_v2, %v3566_v3  ;;  %v3568_v9 = vpop.eup %3567  ;;  %v963_v2 = vld [vmem:[#allocation10 + $0x68] sm:$0xff]  ;;  %v2852_v3 = vcombine.low %v966_v51, %v970_v52 }
 0x448   :  { %3343 = vmatpush3.bf16.msra.mxu0 %v3896_v59  ;;  %3363 = vmatpush3.bf16.msra.mxu1 %v3896_v59  ;;  %v3570_v10 = vpop.eup %3569  ;;  %v2847_v7 = vcombine.high %v959_v0, %v963_v2 }
 0x449   :  { %3344 = vmatprep.subr.bf16.mxu0 %v3756_v15  ;;  %3364 = vmatprep.subr.bf16.mxu1 %v3756_v15  ;;  %v3920_v14 = vpack.c.bf16 %v3568_v9, %v3570_v10  ;;  %v2846_v9 = vcombine.low %v959_v0, %v963_v2  ;;  %v950_v10 = vld [vmem:[#allocation10] sm:$0xff] }
 0x44c   :  { %3345 = vmatpush3.bf16.msra.mxu0 %v3902_v62  ;;  %3365 = vmatpush3.bf16.msra.mxu1 %v3902_v62 }
 0x44d   :  { %3346 = vmatprep.subr.bf16.mxu0 %v3756_v15  ;;  %3366 = vmatprep.subr.bf16.mxu1 %v3756_v15 }
 0x450   :  { %3347 = vmatpush3.bf16.msra.mxu0 %v3908_v1  ;;  %3367 = vmatpush3.bf16.msra.mxu1 %v3908_v1 }
 0x451   :  { %3348 = vmatprep.subr.bf16.mxu0 %v3756_v15  ;;  %3368 = vmatprep.subr.bf16.mxu1 %v3756_v15 }
 0x454   :  { %3349 = vmatpush3.bf16.msra.mxu0 %v3914_v5  ;;  %3369 = vmatpush3.bf16.msra.mxu1 %v3914_v5 }
 0x455   :  { %3350 = vmatprep.subr.bf16.mxu0 %v3756_v15  ;;  %3370 = vmatprep.subr.bf16.mxu1 %v3756_v15 }
 0x458   :  { %3351 = vmatpush3.bf16.msra.mxu0 %v3920_v14  ;;  %3371 = vmatpush3.bf16.msra.mxu1 %v3920_v14 }
 0x459   :  { %1334 = vmatprep.subr.bf16.mxu0 %v2893_v11  ;;  %1375 = vmatprep.subr.bf16.mxu1 %v2895_v12  ;;  %v954_v11 = vld [vmem:[#allocation10 + $0x20] sm:$0xff]  ;;  %v951_v12 = vld [vmem:[#allocation10 + $0x8] sm:$0xff] }
 0x45a   :  { %v2837_v13 = vcombine.high %v950_v10, %v954_v11  ;;  %v2836_v44 = vcombine.low %v950_v10, %v954_v11  ;;  %v2838_v45 = vcombine.low %v951_v12, %v955_v43 }
 0x45b   :  { %3353 = vmatmul.mubr.bf16.vlgmr.msra.gmra.mxu0 %v865_v46  ;;  %3373 = vmatmul.mubr.bf16.vlgmr.msra.gmra.mxu1 %v906_v47  ;;  %v2839_v46 = vcombine.high %v951_v12, %v955_v43  ;;  %v1008_v47 = vld [vmem:[#allocation10 + $0x1d0] sm:$0xff]  ;;  %v969_v43 = vld [vmem:[#allocation10 + $0x98] sm:$0xff] }
 0x45c   :  { %1335 = vmatpush1.bf16.msra.mxu0 %v2892_v48  ;;  %1376 = vmatpush1.bf16.msra.mxu1 %v2894_v16  ;;  %v1012_v48 = vld [vmem:[#allocation10 + $0x1f0] sm:$0xff]  ;;  %v1009_v16 = vld [vmem:[#allocation10 + $0x1d8] sm:$0xff] }
 0x45d   :  { %1336 = vmatprep.subr.bf16.mxu0 %v2885_v49  ;;  %1377 = vmatprep.subr.bf16.mxu1 %v2887_v17  ;;  %v2897_v49 = vcombine.high %v1008_v47, %v1012_v48  ;;  %v1013_v17 = vld [vmem:[#allocation10 + $0x1f8] sm:$0xff]  ;;  %v2896_v18 = vcombine.low %v1008_v47, %v1012_v48  ;;  %v968_v12 = vld [vmem:[#allocation10 + $0x90] sm:$0xff] }
 0x45e   :  { %v2898_v19 = vcombine.low %v1009_v16, %v1013_v17  ;;  %v2899_v20 = vcombine.high %v1009_v16, %v1013_v17  ;;  %1366 = vmatprep.mubr.bf16.mxu0 %v3758_v21  ;;  %1407 = vmatprep.mubr.bf16.mxu1 %v3758_v21  ;;  %v960_v16 = vld [vmem:[#allocation10 + $0x50] sm:$0xff]  ;;  %v961_v17 = vld [vmem:[#allocation10 + $0x58] sm:$0xff] }
 0x460   :  { %1337 = vmatpush1.bf16.msra.mxu0 %v2884_v22  ;;  %1378 = vmatpush1.bf16.msra.mxu1 %v2886_v23  ;;  %v1000_v22 = vld [vmem:[#allocation10 + $0x190] sm:$0xff] }
 0x461   :  { %1338 = vmatprep.subr.bf16.mxu0 %v2877_v24  ;;  %1379 = vmatprep.subr.bf16.mxu1 %v2879_v25  ;;  %v1004_v24 = vld [vmem:[#allocation10 + $0x1b0] sm:$0xff]  ;;  %v1001_v25 = vld [vmem:[#allocation10 + $0x198] sm:$0xff] }
 0x462   :  { %v2890_v51 = vcombine.low %v1001_v25, %v1005_v26 }
 0x464   :  { %1339 = vmatpush1.bf16.msra.mxu0 %v2876_v30  ;;  %1380 = vmatpush1.bf16.msra.mxu1 %v2878_v31 }
 0x465   :  { %1340 = vmatprep.subr.bf16.mxu0 %v2869_v32  ;;  %1381 = vmatprep.subr.bf16.mxu1 %v2871_v33  ;;  %v2889_v32 = vcombine.high %v1000_v22, %v1004_v24  ;;  %v2891_v33 = vcombine.high %v1001_v25, %v1005_v26  ;;  %v956_v25 = vld [vmem:[#allocation10 + $0x30] sm:$0xff]  ;;  %v953_v26 = vld [vmem:[#allocation10 + $0x18] sm:$0xff] }
 0x468   :  { %1341 = vmatpush1.bf16.msra.mxu0 %v2868_v39  ;;  %1382 = vmatpush1.bf16.msra.mxu1 %v2870_v40  ;;  %v997_v39 = vld [vmem:[#allocation10 + $0x178] sm:$0xff] }
 0x469   :  { %1342 = vmatprep.subr.bf16.mxu0 %v2861_v41  ;;  %1383 = vmatprep.subr.bf16.mxu1 %v2863_v42  ;;  %v2888_v42 = vcombine.low %v1000_v22, %v1004_v24  ;;  %v2883_v54 = vcombine.high %v993_v37, %v997_v39  ;;  %v2882_v63 = vcombine.low %v993_v37, %v997_v39  ;;  %v952_v24 = vld [vmem:[#allocation10 + $0x10] sm:$0xff]  ;;  %v1559_v37 = vld [vmem:[#allocation11 + $0x1e8] sm:$0xff] }
 0x46a   :  { %v2840_v39 = vcombine.low %v952_v24, %v956_v25 }
 0x46c   :  { %1343 = vmatpush1.bf16.msra.mxu0 %v2860_v56  ;;  %1384 = vmatpush1.bf16.msra.mxu1 %v2862_v57  ;;  %v984_v56 = vld [vmem:[#allocation10 + $0x110] sm:$0xff] }
 0x46d   :  { %1344 = vmatprep.subr.bf16.mxu0 %v2853_v58  ;;  %1385 = vmatprep.subr.bf16.mxu1 %v2855_v60  ;;  %v988_v57 = vld [vmem:[#allocation10 + $0x130] sm:$0xff]  ;;  %v985_v58 = vld [vmem:[#allocation10 + $0x118] sm:$0xff] }
 0x46e   :  { %v989_v60 = vld [vmem:[#allocation10 + $0x138] sm:$0xff]  ;;  %v2873_v0 = vcombine.high %v984_v56, %v988_v57 }
 0x46f   :  { %v2875_v2 = vcombine.high %v985_v58, %v989_v60 }
 0x470   :  { %1345 = vmatpush1.bf16.msra.mxu0 %v2852_v3  ;;  %1386 = vmatpush1.bf16.msra.mxu1 %v2854_v4  ;;  %v976_v3 = vld [vmem:[#allocation10 + $0xd0] sm:$0xff] }
 0x471   :  { %1346 = vmatprep.subr.bf16.mxu0 %v2845_v6  ;;  %1387 = vmatprep.subr.bf16.mxu1 %v2847_v7  ;;  %v980_v4 = vld [vmem:[#allocation10 + $0xf0] sm:$0xff]  ;;  %v977_v6 = vld [vmem:[#allocation10 + $0xd8] sm:$0xff] }
 0x472   :  { %v981_v7 = vld [vmem:[#allocation10 + $0xf8] sm:$0xff]  ;;  %v2865_v10 = vcombine.high %v976_v3, %v980_v4 }
 0x473   :  { %v2867_v11 = vcombine.high %v977_v6, %v981_v7 }
 0x474   :  { %1347 = vmatpush1.bf16.msra.mxu0 %v2844_v8  ;;  %1388 = vmatpush1.bf16.msra.mxu1 %v2846_v9  ;;  %v2872_v8 = vcombine.low %v984_v56, %v988_v57  ;;  %v2874_v9 = vcombine.low %v985_v58, %v989_v60  ;;  %v2958_v57 = vcombine.low %v1555_v36, %v1559_v37 }
 0x475   :  { %1348 = vmatprep.subr.bf16.mxu0 %v2837_v13  ;;  %1389 = vmatprep.subr.bf16.mxu1 %v2839_v46  ;;  %v972_v13 = vld [vmem:[#allocation10 + $0xb0] sm:$0xff]  ;;  %v2866_v46 = vcombine.low %v977_v6, %v981_v7 }
 0x476   :  { %v2857_v47 = vcombine.high %v968_v12, %v972_v13 }
 0x478   :  { %1349 = vmatpush1.bf16.msra.mxu0 %v2836_v44  ;;  %1390 = vmatpush1.bf16.msra.mxu1 %v2838_v45  ;;  %v973_v44 = vld [vmem:[#allocation10 + $0xb8] sm:$0xff]  ;;  %v2864_v45 = vcombine.low %v976_v3, %v980_v4 }
 0x479   :  { %1416 = vmatprep.subr.bf16.mxu0 %v2897_v49  ;;  %1457 = vmatprep.subr.bf16.mxu1 %v2899_v20  ;;  %v2859_v48 = vcombine.high %v969_v43, %v973_v44  ;;  %v964_v49 = vld [vmem:[#allocation10 + $0x70] sm:$0xff]  ;;  %v2858_v20 = vcombine.low %v969_v43, %v973_v44  ;;  %v1522_v44 = vld [vmem:[#allocation11 + $0xc0] sm:$0xff] }
 0x47a   :  { %v2849_v22 = vcombine.high %v960_v16, %v964_v49 }
 0x51b   :  { %v900_v23 = vpop.f32.mrf.mxu0  ;;  %v3929_v27 = vpop.f32.mrf.mxu1 }
 0x51c   :  { %v947_v28 = vmul.f32 0.999995, %v900_v23 }
 0x51d   :  { %v3354_v29 = vpop.f32.mrf.mxu0  ;;  %v3374_v30 = vpop.f32.mrf.mxu1 }
 0x51e   :  { %v3931_v31 = vpack.c.bf16 %v947_v28, %v947_v28  ;;  %v957_v28 = vld [vmem:[#allocation10 + $0x38] sm:$0xff]  ;;  %v2848_v29 = vcombine.low %v960_v16, %v964_v49 }
 0x51f   :  { %v903_v35 = vpop.f32.mrf.mxu0  ;;  %v944_v40 = vpop.f32.mrf.mxu1 }
 0x520   :  { %1367 = vmatmul.mubr.bf16.vlgmr.msra.gmra.mxu0 %v3931_v31  ;;  %1408 = vmatmul.mubr.bf16.vlgmr.msra.gmra.mxu1 %v3931_v31  ;;  %v1558_v35 = vld [vmem:[#allocation11 + $0x1e0] sm:$0xff]  ;;  %v2842_v40 = vcombine.low %v953_v26, %v957_v28 }
 0x521   :  { %1417 = vmatpush1.bf16.msra.mxu0 %v2896_v18  ;;  %1458 = vmatpush1.bf16.msra.mxu1 %v2898_v19  ;;  %v3355_v41 = vpop.f32.mrf.mxu0  ;;  %v3375_v52 = vpop.f32.mrf.mxu1  ;;  %v965_v18 = vld [vmem:[#allocation10 + $0x78] sm:$0xff]  ;;  %v2856_v19 = vcombine.low %v968_v12, %v972_v13  ;;  %v2956_v56 = vcombine.low %v1554_v34, %v1558_v35 }
 0x522   :  { %1418 = vmatprep.subr.bf16.mxu0 %v2889_v32  ;;  %1459 = vmatprep.subr.bf16.mxu1 %v2891_v33  ;;  %v2851_v23 = vcombine.high %v961_v17, %v965_v18  ;;  %v2850_v30 = vcombine.low %v961_v17, %v965_v18  ;;  %v2841_v32 = vcombine.high %v952_v24, %v956_v25  ;;  %v1550_v52 = vld [vmem:[#allocation11 + $0x1a0] sm:$0xff] }
 0x523   :  { %1448 = vmatprep.mubr.bf16.mxu0 %v3758_v21  ;;  %1489 = vmatprep.mubr.bf16.mxu1 %v3758_v21  ;;  %v2843_v33 = vcombine.high %v953_v26, %v957_v28  ;;  %v2957_v41 = vcombine.high %v1554_v34, %v1558_v35  ;;  %v1514_v18 = vld [vmem:[#allocation11 + $0x80] sm:$0xff] }
 0x524   :  { %v1506_v28 = vld [vmem:[#allocation11 + $0x40] sm:$0xff] }
 0x525   :  { %1419 = vmatpush1.bf16.msra.mxu0 %v2888_v42  ;;  %1460 = vmatpush1.bf16.msra.mxu1 %v2890_v51  ;;  %v2959_v42 = vcombine.high %v1555_v36, %v1559_v37  ;;  %v1546_v51 = vld [vmem:[#allocation11 + $0x180] sm:$0xff] }
 0x526   :  { %1420 = vmatprep.subr.bf16.mxu0 %v2881_v53  ;;  %1461 = vmatprep.subr.bf16.mxu1 %v2883_v54  ;;  %v1547_v53 = vld [vmem:[#allocation11 + $0x188] sm:$0xff]  ;;  %v2949_v58 = vcombine.high %v1546_v51, %v1550_v52  ;;  %v2948_v3 = vcombine.low %v1546_v51, %v1550_v52  ;;  %v1498_v37 = vld [vmem:[#allocation11] sm:$0xff] }
 0x527   :  { %v1551_v54 = vld [vmem:[#allocation11 + $0x1a8] sm:$0xff] }
 0x528   :  { %v2951_v60 = vcombine.high %v1547_v53, %v1551_v54  ;;  %v2950_v4 = vcombine.low %v1547_v53, %v1551_v54  ;;  %v1556_v54 = vld [vmem:[#allocation11 + $0x1d0] sm:$0xff] }
 0x529   :  { %1421 = vmatpush1.bf16.msra.mxu0 %v2880_v61  ;;  %1462 = vmatpush1.bf16.msra.mxu1 %v2882_v63  ;;  %v1538_v61 = vld [vmem:[#allocation11 + $0x140] sm:$0xff] }
 0x52a   :  { %1422 = vmatprep.subr.bf16.mxu0 %v2873_v0  ;;  %1463 = vmatprep.subr.bf16.mxu1 %v2875_v2  ;;  %v1542_v63 = vld [vmem:[#allocation11 + $0x160] sm:$0xff]  ;;  %v1539_v0 = vld [vmem:[#allocation11 + $0x148] sm:$0xff] }
 0x52b   :  { %v1543_v2 = vld [vmem:[#allocation11 + $0x168] sm:$0xff]  ;;  %v2941_v6 = vcombine.high %v1538_v61, %v1542_v63  ;;  %v2940_v12 = vcombine.low %v1538_v61, %v1542_v63 }
 0x52c   :  { %v2943_v7 = vcombine.high %v1539_v0, %v1543_v2 }
 0x52d   :  { %1423 = vmatpush1.bf16.msra.mxu0 %v2872_v8  ;;  %1464 = vmatpush1.bf16.msra.mxu1 %v2874_v9  ;;  %v1530_v8 = vld [vmem:[#allocation11 + $0x100] sm:$0xff] }
 0x52e   :  { %1424 = vmatprep.subr.bf16.mxu0 %v2865_v10  ;;  %1465 = vmatprep.subr.bf16.mxu1 %v2867_v11  ;;  %v1534_v9 = vld [vmem:[#allocation11 + $0x120] sm:$0xff]  ;;  %v1531_v10 = vld [vmem:[#allocation11 + $0x108] sm:$0xff] }
 0x52f   :  { %v1535_v11 = vld [vmem:[#allocation11 + $0x128] sm:$0xff]  ;;  %v2933_v13 = vcombine.high %v1530_v8, %v1534_v9 }
 0x530   :  { %v2935_v43 = vcombine.high %v1531_v10, %v1535_v11  ;;  %v2934_v16 = vcombine.low %v1531_v10, %v1535_v11 }
 0x531   :  { %1425 = vmatpush1.bf16.msra.mxu0 %v2864_v45  ;;  %1466 = vmatpush1.bf16.msra.mxu1 %v2866_v46  ;;  %v1526_v45 = vld [vmem:[#allocation11 + $0xe0] sm:$0xff]  ;;  %v1523_v46 = vld [vmem:[#allocation11 + $0xc8] sm:$0xff] }
 0x532   :  { %1426 = vmatprep.subr.bf16.mxu0 %v2857_v47  ;;  %1467 = vmatprep.subr.bf16.mxu1 %v2859_v48  ;;  %v1527_v47 = vld [vmem:[#allocation11 + $0xe8] sm:$0xff]  ;;  %v2932_v48 = vcombine.low %v1530_v8, %v1534_v9  ;;  %v2925_v49 = vcombine.high %v1522_v44, %v1526_v45 }
 0x533   :  { %v2927_v17 = vcombine.high %v1523_v46, %v1527_v47  ;;  %v2926_v24 = vcombine.low %v1523_v46, %v1527_v47  ;;  %v1532_v47 = vld [vmem:[#allocation11 + $0x110] sm:$0xff] }
 0x535   :  { %1427 = vmatpush1.bf16.msra.mxu0 %v2856_v19  ;;  %1468 = vmatpush1.bf16.msra.mxu1 %v2858_v20  ;;  %v1518_v19 = vld [vmem:[#allocation11 + $0xa0] sm:$0xff]  ;;  %v1515_v20 = vld [vmem:[#allocation11 + $0x88] sm:$0xff] }
 0x536   :  { %1428 = vmatprep.subr.bf16.mxu0 %v2849_v22  ;;  %1469 = vmatprep.subr.bf16.mxu1 %v2851_v23  ;;  %v1519_v22 = vld [vmem:[#allocation11 + $0xa8] sm:$0xff]  ;;  %v2924_v23 = vcombine.low %v1522_v44, %v1526_v45  ;;  %v2917_v25 = vcombine.high %v1514_v18, %v1518_v19 }
 0x537   :  { %v2919_v26 = vcombine.high %v1515_v20, %v1519_v22  ;;  %v2918_v34 = vcombine.low %v1515_v20, %v1519_v22  ;;  %v1524_v22 = vld [vmem:[#allocation11 + $0xd0] sm:$0xff] }
 0x539   :  { %1429 = vmatpush1.bf16.msra.mxu0 %v2848_v29  ;;  %1470 = vmatpush1.bf16.msra.mxu1 %v2850_v30  ;;  %v1510_v29 = vld [vmem:[#allocation11 + $0x60] sm:$0xff]  ;;  %v1507_v30 = vld [vmem:[#allocation11 + $0x48] sm:$0xff] }
 0x53a   :  { %1430 = vmatprep.subr.bf16.mxu0 %v2841_v32  ;;  %1471 = vmatprep.subr.bf16.mxu1 %v2843_v33  ;;  %v1511_v32 = vld [vmem:[#allocation11 + $0x68] sm:$0xff]  ;;  %v2916_v33 = vcombine.low %v1514_v18, %v1518_v19  ;;  %v2909_v35 = vcombine.high %v1506_v28, %v1510_v29 }
 0x53b   :  { %v2911_v36 = vcombine.high %v1507_v30, %v1511_v32  ;;  %v2910_v51 = vcombine.low %v1507_v30, %v1511_v32  ;;  %v1516_v30 = vld [vmem:[#allocation11 + $0x90] sm:$0xff] }
 0x53c   :  { %v1520_v32 = vld [vmem:[#allocation11 + $0xb0] sm:$0xff] }
 0x53d   :  { %1431 = vmatpush1.bf16.msra.mxu0 %v2840_v39  ;;  %1472 = vmatpush1.bf16.msra.mxu1 %v2842_v40  ;;  %v1502_v39 = vld [vmem:[#allocation11 + $0x20] sm:$0xff]  ;;  %v1499_v40 = vld [vmem:[#allocation11 + $0x8] sm:$0xff] }
 0x53e   :  { %1882 = vmatprep.subr.bf16.mxu0 %v2957_v41  ;;  %1923 = vmatprep.subr.bf16.mxu1 %v2959_v42  ;;  %v1503_v41 = vld [vmem:[#allocation11 + $0x28] sm:$0xff]  ;;  %v2908_v42 = vcombine.low %v1506_v28, %v1510_v29  ;;  %v2901_v52 = vcombine.high %v1498_v37, %v1502_v39 }
 0x53f   :  { %v2903_v53 = vcombine.high %v1499_v40, %v1503_v41  ;;  %v2902_v61 = vcombine.low %v1499_v40, %v1503_v41  ;;  %v1508_v40 = vld [vmem:[#allocation11 + $0x50] sm:$0xff] }
 0x540   :  { %1449 = vmatmul.mubr.bf16.vlgmr.msra.gmra.mxu0 %v3931_v31  ;;  %1490 = vmatmul.mubr.bf16.vlgmr.msra.gmra.mxu1 %v3931_v31  ;;  %v2942_v31 = vcombine.low %v1539_v0, %v1543_v2  ;;  %v1548_v2 = vld [vmem:[#allocation11 + $0x190] sm:$0xff] }
 0x541   :  { %1883 = vmatpush1.bf16.msra.mxu0 %v2956_v56  ;;  %1924 = vmatpush1.bf16.msra.mxu1 %v2958_v57  ;;  %v1560_v56 = vld [vmem:[#allocation11 + $0x1f0] sm:$0xff]  ;;  %v1557_v57 = vld [vmem:[#allocation11 + $0x1d8] sm:$0xff] }
 0x542   :  { %1884 = vmatprep.subr.bf16.mxu0 %v2949_v58  ;;  %1925 = vmatprep.subr.bf16.mxu1 %v2951_v60  ;;  %v1561_v58 = vld [vmem:[#allocation11 + $0x1f8] sm:$0xff]  ;;  %v2900_v60 = vcombine.low %v1498_v37, %v1502_v39  ;;  %v2961_v63 = vcombine.high %v1556_v54, %v1560_v56  ;;  %v2960_v8 = vcombine.low %v1556_v54, %v1560_v56  ;;  %v1512_v41 = vld [vmem:[#allocation11 + $0x70] sm:$0xff] }
 0x543   :  { %1914 = vmatprep.mubr.bf16.mxu0 %v3758_v21  ;;  %1955 = vmatprep.mubr.bf16.mxu1 %v3758_v21  ;;  %v2963_v0 = vcombine.high %v1557_v57, %v1561_v58  ;;  %v2962_v9 = vcombine.low %v1557_v57, %v1561_v58  ;;  %v2921_v37 = vcombine.high %v1516_v30, %v1520_v32  ;;  %v1500_v57 = vld [vmem:[#allocation11 + $0x10] sm:$0xff] }
 0x544   :  { %v2913_v54 = vcombine.high %v1508_v40, %v1512_v41  ;;  %v1504_v58 = vld [vmem:[#allocation11 + $0x30] sm:$0xff] }
 0x545   :  { %1885 = vmatpush1.bf16.msra.mxu0 %v2948_v3  ;;  %1926 = vmatpush1.bf16.msra.mxu1 %v2950_v4  ;;  %v1552_v3 = vld [vmem:[#allocation11 + $0x1b0] sm:$0xff]  ;;  %v1549_v4 = vld [vmem:[#allocation11 + $0x198] sm:$0xff] }
 0x546   :  { %1886 = vmatprep.subr.bf16.mxu0 %v2941_v6  ;;  %1927 = vmatprep.subr.bf16.mxu1 %v2943_v7  ;;  %v1553_v6 = vld [vmem:[#allocation11 + $0x1b8] sm:$0xff]  ;;  %v3943_v7 = vpack.c.bf16 %v3929_v27, %v3929_v27  ;;  %v2953_v10 = vcombine.high %v1548_v2, %v1552_v3  ;;  %v2952_v27 = vcombine.low %v1548_v2, %v1552_v3 }
 0x547   :  { %v2955_v11 = vcombine.high %v1549_v4, %v1553_v6  ;;  %v2954_v44 = vcombine.low %v1549_v4, %v1553_v6  ;;  %v2905_v2 = vcombine.high %v1500_v57, %v1504_v58  ;;  %v2904_v4 = vcombine.low %v1500_v57, %v1504_v58 }
 0x549   :  { %1887 = vmatpush1.bf16.msra.mxu0 %v2940_v12  ;;  %1928 = vmatpush1.bf16.msra.mxu1 %v2942_v31  ;;  %v1540_v12 = vld [vmem:[#allocation11 + $0x150] sm:$0xff] }
 0x54a   :  { %1888 = vmatprep.subr.bf16.mxu0 %v2933_v13  ;;  %1929 = vmatprep.subr.bf16.mxu1 %v2935_v43  ;;  %v1544_v31 = vld [vmem:[#allocation11 + $0x170] sm:$0xff]  ;;  %v1541_v13 = vld [vmem:[#allocation11 + $0x158] sm:$0xff] }
 0x54b   :  { %v1545_v43 = vld [vmem:[#allocation11 + $0x178] sm:$0xff]  ;;  %v2945_v45 = vcombine.high %v1540_v12, %v1544_v31 }
 0x54c   :  { %v2947_v46 = vcombine.high %v1541_v13, %v1545_v43  ;;  %v2946_v18 = vcombine.low %v1541_v13, %v1545_v43  ;;  %v3448_v13 = vld [vmem:[#allocation13 + $0x30] sm:$0xff]  }
 0x54d   :  { %1889 = vmatpush1.bf16.msra.mxu0 %v2932_v48  ;;  %1930 = vmatpush1.bf16.msra.mxu1 %v2934_v16  ;;  %v1536_v48 = vld [vmem:[#allocation11 + $0x130] sm:$0xff]  ;;  %v1533_v16 = vld [vmem:[#allocation11 + $0x118] sm:$0xff] }
 0x54e   :  { %1890 = vmatprep.subr.bf16.mxu0 %v2925_v49  ;;  %1931 = vmatprep.subr.bf16.mxu1 %v2927_v17  ;;  %v1537_v49 = vld [vmem:[#allocation11 + $0x138] sm:$0xff]  ;;  %v2944_v17 = vcombine.low %v1540_v12, %v1544_v31  ;;  %v2937_v19 = vcombine.high %v1532_v47, %v1536_v48  ;;  %v3447_v12 = vld [vmem:[#allocation13 + $0x70] sm:$0xff]  }
 0x54f   :  { %v2939_v20 = vcombine.high %v1533_v16, %v1537_v49  ;;  %v2938_v28 = vcombine.low %v1533_v16, %v1537_v49  ;;  %v3449_v31 = vld [vmem:[#allocation13 + $0xf0] sm:$0xff]   ;;  %v3458_v16 = vld [vmem:[#allocation13 + $0xa0] sm:$0xff]   ;;  %v3459_v49 = vld [vmem:[#allocation13 + $0x58] sm:$0xff]  }
 0x550   :  { %v3450_v43 = vld [vmem:[#allocation13 + $0xb0] sm:$0xff]  }
 0x551   :  { %1891 = vmatpush1.bf16.msra.mxu0 %v2924_v23  ;;  %1932 = vmatpush1.bf16.msra.mxu1 %v2926_v24  ;;  %v1528_v23 = vld [vmem:[#allocation11 + $0xf0] sm:$0xff]  ;;  %v1525_v24 = vld [vmem:[#allocation11 + $0xd8] sm:$0xff] }
 0x552   :  { %1892 = vmatprep.subr.bf16.mxu0 %v2917_v25  ;;  %1933 = vmatprep.subr.bf16.mxu1 %v2919_v26  ;;  %v1529_v25 = vld [vmem:[#allocation11 + $0xf8] sm:$0xff]  ;;  %v2936_v26 = vcombine.low %v1532_v47, %v1536_v48  ;;  %v2929_v29 = vcombine.high %v1524_v22, %v1528_v23  ;;  %v3457_v47 = vld [vmem:[#allocation13 + $0xe0] sm:$0xff]  }
 0x553   :  { %v3456_v48 = vld [vmem:[#allocation13 + $0x20] sm:$0xff]  }
 0x555   :  { %1893 = vmatpush1.bf16.msra.mxu0 %v2916_v33  ;;  %1934 = vmatpush1.bf16.msra.mxu1 %v2918_v34  ;;  %v1517_v33 = vld [vmem:[#allocation11 + $0x98] sm:$0xff] }
 0x556   :  { %1894 = vmatprep.subr.bf16.mxu0 %v2909_v35  ;;  %1935 = vmatprep.subr.bf16.mxu1 %v2911_v36  ;;  %v1521_v34 = vld [vmem:[#allocation11 + $0xb8] sm:$0xff]  ;;  %v2928_v35 = vcombine.low %v1524_v22, %v1528_v23  ;;  %v2930_v36 = vcombine.low %v1525_v24, %v1529_v25  ;;  %v3465_v22 = vld [vmem:[#allocation13 + $0xd0] sm:$0xff]  }
 0x557   :  { %v2923_v39 = vcombine.high %v1517_v33, %v1521_v34  ;;  %v3464_v23 = vld [vmem:[#allocation13 + $0x10] sm:$0xff]  }
 0x559   :  { %1895 = vmatpush1.bf16.msra.mxu0 %v2908_v42  ;;  %1936 = vmatpush1.bf16.msra.mxu1 %v2910_v51  ;;  %v1509_v42 = vld [vmem:[#allocation11 + $0x58] sm:$0xff] }
 0x55a   :  { %1896 = vmatprep.subr.bf16.mxu0 %v2901_v52  ;;  %1937 = vmatprep.subr.bf16.mxu1 %v2903_v53  ;;  %v1513_v51 = vld [vmem:[#allocation11 + $0x78] sm:$0xff]  ;;  %v2920_v52 = vcombine.low %v1516_v30, %v1520_v32  ;;  %v2922_v53 = vcombine.low %v1517_v33, %v1521_v34  ;;  %v3472_v30 = vld [vmem:[#allocation13] sm:$0xff]  }
 0x55b   :  { %v2915_v56 = vcombine.high %v1509_v42, %v1513_v51  ;;  %v3473_v32 = vld [vmem:[#allocation13 + $0xc0] sm:$0xff]   ;;  %v3475_v34 = vld [vmem:[#allocation13 + $0x178] sm:$0xff]  }
 0x55c   :  { %v3474_v33 = vld [vmem:[#allocation13 + $0x80] sm:$0xff]  }
 0x55d   :  { %1897 = vmatpush1.bf16.msra.mxu0 %v2900_v60  ;;  %1938 = vmatpush1.bf16.msra.mxu1 %v2902_v61  ;;  %v1501_v60 = vld [vmem:[#allocation11 + $0x18] sm:$0xff] }
 0x55e   :  { %1964 = vmatprep.subr.bf16.mxu0 %v2961_v63  ;;  %2005 = vmatprep.subr.bf16.mxu1 %v2963_v0  ;;  %v1505_v61 = vld [vmem:[#allocation11 + $0x38] sm:$0xff]  ;;  %v2912_v63 = vcombine.low %v1508_v40, %v1512_v41  ;;  %v2914_v0 = vcombine.low %v1509_v42, %v1513_v51 }
 0x55f   :  { %v2907_v3 = vcombine.high %v1501_v60, %v1505_v61  ;;  %v2906_v6 = vcombine.low %v1501_v60, %v1505_v61 }
 0x560   :  { %1915 = vmatmul.mubr.bf16.vlgmr.msra.gmra.mxu0 %v3943_v7  ;;  %1956 = vmatmul.mubr.bf16.vlgmr.msra.gmra.mxu1 %v3943_v7 }
 0x561   :  { %1965 = vmatpush1.bf16.msra.mxu0 %v2960_v8  ;;  %2006 = vmatpush1.bf16.msra.mxu1 %v2962_v9  ;;  %v3443_v8 = vld [vmem:[#allocation13 + $0x78] sm:$0xff]  }
 0x562   :  { %1966 = vmatprep.subr.bf16.mxu0 %v2953_v10  ;;  %2007 = vmatprep.subr.bf16.mxu1 %v2955_v11  ;;  %v3444_v9 = vld [vmem:[#allocation13 + $0x38] sm:$0xff]  }
 0x563   :  { %1996 = vmatprep.mubr.bf16.mxu0 %v3758_v21  ;;  %2037 = vmatprep.mubr.bf16.mxu1 %v3758_v21  ;;  %v2931_v21 = vcombine.high %v1525_v24, %v1529_v25  ;;  %v3445_v10 = vld [vmem:[#allocation13 + $0xf8] sm:$0xff]   ;;  %v3466_v24 = vld [vmem:[#allocation13 + $0x90] sm:$0xff]   ;;  %v3467_v25 = vld [vmem:[#allocation13 + $0x48] sm:$0xff]  }
 0x564   :  { %v3446_v11 = vld [vmem:[#allocation13 + $0xb8] sm:$0xff]  }
 0x565   :  { %1967 = vmatpush1.bf16.msra.mxu0 %v2952_v27  ;;  %2008 = vmatpush1.bf16.msra.mxu1 %v2954_v44  ;;  %v3451_v27 = vld [vmem:[#allocation13 + $0x68] sm:$0xff]  }
 0x566   :  { %1968 = vmatprep.subr.bf16.mxu0 %v2945_v45  ;;  %2009 = vmatprep.subr.bf16.mxu1 %v2947_v46  ;;  %v3453_v44 = vld [vmem:[#allocation13 + $0xe8] sm:$0xff]   ;;  %v3455_v46 = vld [vmem:[#allocation13 + $0x60] sm:$0xff]  }
 0x567   :  { %v3452_v45 = vld [vmem:[#allocation13 + $0x28] sm:$0xff]  }
 0x569   :  { %1969 = vmatpush1.bf16.msra.mxu0 %v2944_v17  ;;  %2010 = vmatpush1.bf16.msra.mxu1 %v2946_v18  ;;  %v3461_v17 = vld [vmem:[#allocation13 + $0xd8] sm:$0xff]  }
 0x56a   :  { %1970 = vmatprep.subr.bf16.mxu0 %v2937_v19  ;;  %2011 = vmatprep.subr.bf16.mxu1 %v2939_v20  ;;  %v3460_v18 = vld [vmem:[#allocation13 + $0x18] sm:$0xff]   ;;  %v3463_v20 = vld [vmem:[#allocation13 + $0x50] sm:$0xff]  }
 0x56b   :  { %v3462_v19 = vld [vmem:[#allocation13 + $0x98] sm:$0xff]  }
 0x56d   :  { %1971 = vmatpush1.bf16.msra.mxu0 %v2936_v26  ;;  %2012 = vmatpush1.bf16.msra.mxu1 %v2938_v28  ;;  %v3468_v26 = vld [vmem:[#allocation13 + $0x8] sm:$0xff]  }
 0x56e   :  { %1972 = vmatprep.subr.bf16.mxu0 %v2929_v29  ;;  %2013 = vmatprep.subr.bf16.mxu1 %v2931_v21  ;;  %v3469_v28 = vld [vmem:[#allocation13 + $0xc8] sm:$0xff]   ;;  %v3471_v21 = vld [vmem:[#allocation13 + $0x40] sm:$0xff]  }
 0x56f   :  { %v3470_v29 = vld [vmem:[#allocation13 + $0x88] sm:$0xff]  }
 0x571   :  { %1973 = vmatpush1.bf16.msra.mxu0 %v2928_v35  ;;  %2014 = vmatpush1.bf16.msra.mxu1 %v2930_v36  ;;  %v3477_v35 = vld [vmem:[#allocation13 + $0x1f8] sm:$0xff]  }
 0x572   :  { %1974 = vmatprep.subr.bf16.mxu0 %v2921_v37  ;;  %2015 = vmatprep.subr.bf16.mxu1 %v2923_v39 }
 0x575   :  { %1975 = vmatpush1.bf16.msra.mxu0 %v2920_v52  ;;  %2016 = vmatpush1.bf16.msra.mxu1 %v2922_v53 }
 0x576   :  { %1976 = vmatprep.subr.bf16.mxu0 %v2913_v54  ;;  %2017 = vmatprep.subr.bf16.mxu1 %v2915_v56 }
 0x579   :  { %1977 = vmatpush1.bf16.msra.mxu0 %v2912_v63  ;;  %2018 = vmatpush1.bf16.msra.mxu1 %v2914_v0 }
 0x57a   :  { %1978 = vmatprep.subr.bf16.mxu0 %v2905_v2  ;;  %2019 = vmatprep.subr.bf16.mxu1 %v2907_v3 }
 0x57d   :  { %1979 = vmatpush1.bf16.msra.mxu0 %v2904_v4  ;;  %2020 = vmatpush1.bf16.msra.mxu1 %v2906_v6 }
 0x57e   :  { %3111 = vmatprep.subr.bf16.mxu0 %v3443_v8  ;;  %3133 = vmatprep.subr.bf16.mxu1 %v3445_v10 }
 0x580   :  { %1997 = vmatmul.mubr.bf16.vlgmr.msra.gmra.mxu0 %v3943_v7  ;;  %2038 = vmatmul.mubr.bf16.vlgmr.msra.gmra.mxu1 %v3943_v7  ;;  %v3454_v7 = vld [vmem:[#allocation13 + $0xa8] sm:$0xff]  }
 0x581   :  { %3112 = vmatpush3.bf16.msra.mxu0 %v3444_v9  ;;  %3134 = vmatpush3.bf16.msra.mxu1 %v3446_v11 }
 0x582   :  { %3113 = vmatprep.subr.bf16.mxu0 %v3447_v12  ;;  %3135 = vmatprep.subr.bf16.mxu1 %v3449_v31 }
 0x585   :  { %3114 = vmatpush3.bf16.msra.mxu0 %v3448_v13  ;;  %3136 = vmatpush3.bf16.msra.mxu1 %v3450_v43  ;;  %v3476_v43 = vld [vmem:[#allocation13 + $0x138] sm:$0xff]  }
 0x586   :  { %3115 = vmatprep.subr.bf16.mxu0 %v3451_v27  ;;  %3137 = vmatprep.subr.bf16.mxu1 %v3453_v44  ;;  %v3478_v27 = vld [vmem:[#allocation13 + $0x1b8] sm:$0xff]  }
 0x589   :  { %3116 = vmatpush3.bf16.msra.mxu0 %v3452_v45  ;;  %3138 = vmatpush3.bf16.msra.mxu1 %v3454_v7 }
 0x58a   :  { %3117 = vmatprep.subr.bf16.mxu0 %v3455_v46  ;;  %3139 = vmatprep.subr.bf16.mxu1 %v3457_v47  ;;  %v3479_v47 = vld [vmem:[#allocation13 + $0x170] sm:$0xff]  }
 0x58d   :  { %3118 = vmatpush3.bf16.msra.mxu0 %v3456_v48  ;;  %3140 = vmatpush3.bf16.msra.mxu1 %v3458_v16  ;;  %v3481_v48 = vld [vmem:[#allocation13 + $0x1f0] sm:$0xff]  }
 0x58e   :  { %3119 = vmatprep.subr.bf16.mxu0 %v3459_v49  ;;  %3141 = vmatprep.subr.bf16.mxu1 %v3461_v17  ;;  %v3480_v16 = vld [vmem:[#allocation13 + $0x130] sm:$0xff]   ;;  %v3483_v17 = vld [vmem:[#allocation13 + $0x168] sm:$0xff]  }
 0x58f   :  { %v3482_v49 = vld [vmem:[#allocation13 + $0x1b0] sm:$0xff]  }
 0x591   :  { %3120 = vmatpush3.bf16.msra.mxu0 %v3460_v18  ;;  %3142 = vmatpush3.bf16.msra.mxu1 %v3462_v19  ;;  %v3485_v18 = vld [vmem:[#allocation13 + $0x1e8] sm:$0xff]  }
 0x592   :  { %3121 = vmatprep.subr.bf16.mxu0 %v3463_v20  ;;  %3143 = vmatprep.subr.bf16.mxu1 %v3465_v22  ;;  %v3484_v19 = vld [vmem:[#allocation13 + $0x128] sm:$0xff]   ;;  %v3487_v22 = vld [vmem:[#allocation13 + $0x160] sm:$0xff]  }
 0x593   :  { %v3486_v20 = vld [vmem:[#allocation13 + $0x1a8] sm:$0xff]  }
 0x595   :  { %3122 = vmatpush3.bf16.msra.mxu0 %v3464_v23  ;;  %3144 = vmatpush3.bf16.msra.mxu1 %v3466_v24  ;;  %v3489_v23 = vld [vmem:[#allocation13 + $0x1e0] sm:$0xff]  }
 0x596   :  { %3123 = vmatprep.subr.bf16.mxu0 %v3467_v25  ;;  %3145 = vmatprep.subr.bf16.mxu1 %v3469_v28  ;;  %v3488_v24 = vld [vmem:[#allocation13 + $0x120] sm:$0xff]   ;;  %v3493_v28 = vld [vmem:[#allocation13 + $0x1d8] sm:$0xff]  }
 0x597   :  { %v3490_v25 = vld [vmem:[#allocation13 + $0x1a0] sm:$0xff]  }
 0x599   :  { %3124 = vmatpush3.bf16.msra.mxu0 %v3468_v26  ;;  %3146 = vmatpush3.bf16.msra.mxu1 %v3470_v29  ;;  %v3491_v26 = vld [vmem:[#allocation13 + $0x158] sm:$0xff]  }
 0x59a   :  { %3125 = vmatprep.subr.bf16.mxu0 %v3471_v21  ;;  %3147 = vmatprep.subr.bf16.mxu1 %v3473_v32  ;;  %v3492_v29 = vld [vmem:[#allocation13 + $0x118] sm:$0xff]   ;;  %v3497_v32 = vld [vmem:[#allocation13 + $0x1d0] sm:$0xff]  }
 0x59b   :  { %v3494_v21 = vld [vmem:[#allocation13 + $0x198] sm:$0xff]  }
 0x59d   :  { %3126 = vmatpush3.bf16.msra.mxu0 %v3472_v30  ;;  %3148 = vmatpush3.bf16.msra.mxu1 %v3474_v33  ;;  %v3495_v30 = vld [vmem:[#allocation13 + $0x150] sm:$0xff]  }
 0x59e   :  { %3155 = vmatprep.subr.bf16.mxu0 %v3475_v34  ;;  %3177 = vmatprep.subr.bf16.mxu1 %v3477_v35  ;;  %v3496_v33 = vld [vmem:[#allocation13 + $0x110] sm:$0xff]   ;;  %v3499_v35 = vld [vmem:[#allocation13 + $0x148] sm:$0xff]  }
 0x59f   :  { %v3498_v34 = vld [vmem:[#allocation13 + $0x190] sm:$0xff]  }
 0x5e0   :  { %v1368_v36 = vpop.f32.mrf.mxu0  ;;  %v1409_v37 = vpop.f32.mrf.mxu1 }
 0x5e2   :  { %v1370_v39 = vpop.f32.mrf.mxu0  ;;  %v1411_v40 = vpop.f32.mrf.mxu1 }
 0x5e4   :  { %v1372_v41 = vpop.f32.mrf.mxu0  ;;  %v1413_v42 = vpop.f32.mrf.mxu1 }
 0x5e5   :  { %v3505_v41 = vld [vmem:[#allocation13 + $0x1c0] sm:$0xff]  }
 0x5e6   :  { %v1373_v51 = vpop.f32.mrf.mxu0  ;;  %v1414_v52 = vpop.f32.mrf.mxu1 }
 0x5e7   :  { %v3504_v52 = vld [vmem:[#allocation13 + $0x100] sm:$0xff]  }
 0x600   :  { %v3951_v53 = vpop.f32.mrf.mxu0  ;;  %v3953_v54 = vpop.f32.mrf.mxu1 }
 0x602   :  { %v3955_v56 = vpop.f32.mrf.mxu0  ;;  %v3957_v57 = vpop.f32.mrf.mxu1 }
 0x604   :  { %v1454_v58 = vpop.f32.mrf.mxu0  ;;  %v1495_v60 = vpop.f32.mrf.mxu1 }
 0x605   :  { %v3506_v58 = vld [vmem:[#allocation13 + $0x180] sm:$0xff]  }
 0x606   :  { %v1455_v61 = vpop.f32.mrf.mxu0  ;;  %v1496_v63 = vpop.f32.mrf.mxu1 }
 0x620   :  { %v1916_v0 = vpop.f32.mrf.mxu0  ;;  %v1957_v2 = vpop.f32.mrf.mxu1 }
 0x621   :  { %v2046_v3 = vmul.f32 %v1916_v0, %v1368_v36  ;;  %v2048_v4 = vmul.f32 %v1957_v2, %v1409_v37  ;;  %v3501_v36 = vld [vmem:[#allocation13 + $0x1c8] sm:$0xff]  }
 0x622   :  { %v1918_v6 = vpop.f32.mrf.mxu0  ;;  %v1959_v8 = vpop.f32.mrf.mxu1  ;;  %v3500_v37 = vld [vmem:[#allocation13 + $0x108] sm:$0xff]  }
 0x623   :  { %v2047_v9 = vmul.f32 %v1918_v6, %v1370_v39  ;;  %v2049_v10 = vmul.f32 %v1959_v8, %v1411_v40  ;;  %v2054_v44 = vpack.c.bf16 %v2046_v3, %v2046_v3  ;;  %v2056_v45 = vpack.c.bf16 %v2048_v4, %v2048_v4  ;;  %v3502_v39 = vld [vmem:[#allocation13 + $0x188] sm:$0xff]   ;;  %v3503_v40 = vld [vmem:[#allocation13 + $0x140] sm:$0xff]  }
 0x624   :  { %v1920_v11 = vpop.f32.mrf.mxu0  ;;  %v1961_v12 = vpop.f32.mrf.mxu1 }
 0x625   :  { %v2055_v31 = vpack.c.bf16 %v2047_v9, %v2047_v9  ;;  %v2057_v13 = vpack.c.bf16 %v2049_v10, %v2049_v10 }
 0x626   :  { %v1921_v7 = vpop.f32.mrf.mxu0  ;;  %v1962_v46 = vpop.f32.mrf.mxu1 }
 0x627   :  { %2606 = vmatprep.mubr.bf16.mxu0 %v2055_v31  ;;  %2646 = vmatprep.mubr.bf16.mxu1 %v2057_v13 }
 0x628   :  { %2607 = vmatmul.mubr.bf16.vlgmr.msra.gmra.mxu0 %v2054_v44  ;;  %2647 = vmatmul.mubr.bf16.vlgmr.msra.gmra.mxu1 %v2056_v45 }
 0x629   :  { %3156 = vmatpush3.bf16.msra.mxu0 %v3476_v43  ;;  %3178 = vmatpush3.bf16.msra.mxu1 %v3478_v27 }
 0x62a   :  { %3157 = vmatprep.subr.bf16.mxu0 %v3479_v47  ;;  %3179 = vmatprep.subr.bf16.mxu1 %v3481_v48 }
 0x62d   :  { %3158 = vmatpush3.bf16.msra.mxu0 %v3480_v16  ;;  %3180 = vmatpush3.bf16.msra.mxu1 %v3482_v49 }
 0x62e   :  { %3159 = vmatprep.subr.bf16.mxu0 %v3483_v17  ;;  %3181 = vmatprep.subr.bf16.mxu1 %v3485_v18 }
 0x631   :  { %3160 = vmatpush3.bf16.msra.mxu0 %v3484_v19  ;;  %3182 = vmatpush3.bf16.msra.mxu1 %v3486_v20 }
 0x632   :  { %3161 = vmatprep.subr.bf16.mxu0 %v3487_v22  ;;  %3183 = vmatprep.subr.bf16.mxu1 %v3489_v23 }
 0x635   :  { %3162 = vmatpush3.bf16.msra.mxu0 %v3488_v24  ;;  %3184 = vmatpush3.bf16.msra.mxu1 %v3490_v25 }
 0x636   :  { %3163 = vmatprep.subr.bf16.mxu0 %v3491_v26  ;;  %3185 = vmatprep.subr.bf16.mxu1 %v3493_v28 }
 0x639   :  { %3164 = vmatpush3.bf16.msra.mxu0 %v3492_v29  ;;  %3186 = vmatpush3.bf16.msra.mxu1 %v3494_v21 }
 0x63a   :  { %3165 = vmatprep.subr.bf16.mxu0 %v3495_v30  ;;  %3187 = vmatprep.subr.bf16.mxu1 %v3497_v32 }
 0x63d   :  { %3166 = vmatpush3.bf16.msra.mxu0 %v3496_v33  ;;  %3188 = vmatpush3.bf16.msra.mxu1 %v3498_v34 }
 0x63e   :  { %3167 = vmatprep.subr.bf16.mxu0 %v3499_v35  ;;  %3189 = vmatprep.subr.bf16.mxu1 %v3501_v36 }
 0x640   :  { %v1998_v42 = vpop.f32.mrf.mxu0  ;;  %v2039_v51 = vpop.f32.mrf.mxu1 }
 0x641   :  { %3168 = vmatpush3.bf16.msra.mxu0 %v3500_v37  ;;  %3190 = vmatpush3.bf16.msra.mxu1 %v3502_v39  ;;  %v2050_v60 = vmul.f32 %v1998_v42, %v3951_v53  ;;  %v2052_v61 = vmul.f32 %v2039_v51, %v3953_v54 }
 0x642   :  { %v2000_v63 = vpop.f32.mrf.mxu0  ;;  %v2041_v0 = vpop.f32.mrf.mxu1  ;;  %3169 = vmatprep.subr.bf16.mxu0 %v3503_v40  ;;  %3191 = vmatprep.subr.bf16.mxu1 %v3505_v41 }
 0x643   :  { %v2051_v2 = vmul.f32 %v2000_v63, %v3955_v56  ;;  %v2053_v3 = vmul.f32 %v2041_v0, %v3957_v57  ;;  %v2058_v10 = vpack.c.bf16 %v2050_v60, %v2050_v60  ;;  %v2060_v11 = vpack.c.bf16 %v2052_v61, %v2052_v61 }
 0x644   :  { %v2002_v4 = vpop.f32.mrf.mxu0  ;;  %v2043_v6 = vpop.f32.mrf.mxu1 }
 0x645   :  { %v2059_v8 = vpack.c.bf16 %v2051_v2, %v2051_v2  ;;  %v2061_v9 = vpack.c.bf16 %v2053_v3, %v2053_v3  ;;  %3170 = vmatpush3.bf16.msra.mxu0 %v3504_v52  ;;  %3192 = vmatpush3.bf16.msra.mxu1 %v3506_v58 }
 0x646   :  { %v2003_v12 = vpop.f32.mrf.mxu0  ;;  %v2044_v53 = vpop.f32.mrf.mxu1  ;;  %3376 = vmatprep.subr.bf16.mxu0 %v3756_v15 }
 0x647   :  { %2686 = vmatprep.mubr.bf16.mxu0 %v2059_v8  ;;  %2726 = vmatprep.mubr.bf16.mxu1 %v2061_v9 }
 0x648   :  { %2687 = vmatmul.mubr.bf16.vlgmr.msra.gmra.mxu0 %v2058_v10  ;;  %2727 = vmatmul.mubr.bf16.vlgmr.msra.gmra.mxu1 %v2060_v11 }
 0x649   :  { %3377 = vmatpush3.bf16.xpose.msra.mxu0 %v3878_v38  ;;  %3392 = vmatprep.mubr.msk.bf16.mxu0 %vm3757_vm0, %v3756_v15 }
 0x64a   :  { %3378 = vmatprep.subr.bf16.mxu0 %v3756_v15 }
 0x651   :  { %3379 = vmatpush3.bf16.xpose.msra.mxu0 %v3884_v50 }
 0x652   :  { %3380 = vmatprep.subr.bf16.mxu0 %v3756_v15 }
 0x659   :  { %3381 = vmatpush3.bf16.xpose.msra.mxu0 %v3890_v55 }
 0x65a   :  { %3382 = vmatprep.subr.bf16.mxu0 %v3756_v15 }
 0x661   :  { %3383 = vmatpush3.bf16.xpose.msra.mxu0 %v3896_v59 }
 0x662   :  { %3384 = vmatprep.subr.bf16.mxu0 %v3756_v15 }
 0x669   :  { %3385 = vmatpush3.bf16.xpose.msra.mxu0 %v3902_v62 }
 0x66a   :  { %3386 = vmatprep.subr.bf16.mxu0 %v3756_v15 }
 0x671   :  { %3387 = vmatpush3.bf16.xpose.msra.mxu0 %v3908_v1 }
 0x672   :  { %3388 = vmatprep.subr.bf16.mxu0 %v3756_v15 }
 0x679   :  { %3389 = vmatpush3.bf16.xpose.msra.mxu0 %v3914_v5 }
 0x67a   :  { %3390 = vmatprep.subr.bf16.mxu0 %v3756_v15 }
 0x681   :  { %3391 = vmatpush3.bf16.xpose.msra.mxu0 %v3920_v14 }
 0x6e8   :  { %v3127_v38 = vpop.f32.mrf.mxu0  ;;  %v3149_v50 = vpop.f32.mrf.mxu1 }
 0x6ea   :  { %v3128_v55 = vpop.f32.mrf.mxu0  ;;  %v3150_v59 = vpop.f32.mrf.mxu1 }
 0x6eb   :  { %v3129_v31 = vadd.f32 %v3128_v55, %v3127_v38  ;;  %v3151_v13 = vadd.f32 %v3150_v59, %v3149_v50 }
 0x6ec   :  { %v3130_v54 = vpop.f32.mrf.mxu0  ;;  %v3152_v56 = vpop.f32.mrf.mxu1 }
 0x6ed   :  { %v2649_v45 = vadd.f32 %v3151_v13, %v3129_v31 }
 0x6ee   :  { %v3131_v57 = vpop.f32.mrf.mxu0  ;;  %v3153_v62 = vpop.f32.mrf.mxu1 }
 0x708   :  { %v3171_v43 = vpop.f32.mrf.mxu0  ;;  %v3193_v1 = vpop.f32.mrf.mxu1 }
 0x70a   :  { %v3172_v27 = vpop.f32.mrf.mxu0  ;;  %v3194_v44 = vpop.f32.mrf.mxu1 }
 0x70b   :  { %v3173_v5 = vadd.f32 %v3172_v27, %v3171_v43  ;;  %v3195_v14 = vadd.f32 %v3194_v44, %v3193_v1 }
 0x70c   :  { %v3174_v7 = vpop.f32.mrf.mxu0  ;;  %v3196_v15 = vpop.f32.mrf.mxu1 }
 0x70d   :  { %v2689_v46 = vadd.f32 %v3173_v5, %v2649_v45 }
 0x70e   :  { %v3175_v47 = vpop.f32.mrf.mxu0  ;;  %v3197_v48 = vpop.f32.mrf.mxu1 }
 0x70f   :  { %v2729_v16 = vadd.f32 %v3195_v14, %v2689_v46 }
 0x711   :  { %v2734_v49 = vmul.f32 0.999995, %v2729_v16 }
 0x713   :  { %vm2735_vm1 = vcmp.gt.f32.partialorder %v2734_v49, 0.0  ;;  %v2736_v17 = vmul.f32 0.01, %v2734_v49 }
 0x715   :  { %v2737_v18 = vsel %vm2735_vm1, %v2734_v49, %v2736_v17 }
 0x716   :  { %v2738_v19 = vpack.c.bf16 %v2737_v18, %v2737_v18 }
 0x718   :  { %3393 = vmatmul.mubr.bf16.vlgmr.msra.gmra.mxu0 %v2738_v19 }
 0x7d8   :  { %v2773_v20 = vpop.f32.mrf.mxu0 }
 0x7d9   :  { %v3028_v22 = vmul.f32 -1.442695, %v2773_v20 }
 0x7da   :  { %v3394_v23 = vpop.f32.mrf.mxu0 }
 0x7db   :  { %3571 = vpow2.f32 %v3028_v22 }
 0x7dc   :  { %v2776_v24 = vpop.f32.mrf.mxu0 }
 0x7de   :  { %v3395_v25 = vpop.f32.mrf.mxu0 }
 0x7e8   :  { %v3572_v26 = vpop.eup %3571 }
 0x7e9   :  { %v2782_v28 = vadd.f32 1.0, %v3572_v26 }
 0x7eb   :  { %3573 = vrcp.f32 %v2782_v28 }
 0x7f8   :  { %v3574_v29 = vpop.eup %3573 }
 0x7f9   :  { %2785 = vst [vmem:[#allocation14] sm:$0xff] %v3574_v29 }
 0x7fa   :  { %3726 = shalt.err (!%p3723_p11)
}
 0x7fb   :  { %2795 = dma.vmem_to_hbm [thread:$0]  %s2793_s10, 128, %s3992_s8, [#allocation4]  }
 0x7fc   :  { %3743 = dma.done.wait [#allocation4], 128  }
 0x7fd   :  { %3744 = vsyncadd [#allocation4], 4294967168 }
 0x7fe   :  { %2799 = vsyncpa [#allocation3], 1 }
 0x7ff   :  { %2800 = vsyncpa [#allocation6], 1 }
 0x800   :  { %2801 = vsyncpa [#allocation9], 1 }
 0x801   :  { %2802 = vsyncpa [#allocation12], 1 }
 0x802   :  { %2803 = vsyncpa [#allocation4], 1 }

</bundles_post_ra>
